<compile_context>
chip_gen: v5e
topology: v5e:2x2
jax: 0.10.0
libtpu: 0.0.40
codegen_flags: <defaults>
</compile_context>

<pallas_src>
import functools

import jax
import jax.numpy as jnp
from jax.experimental import pallas as pl
from jax.experimental.pallas import tpu as pltpu

HIDDEN = 2048  # fixed by the module (nn.Linear(n_units, 2048))


def _cdiv(a, b):
    return (a + b - 1) // b


def _round_up(x, m):
    return ((x + m - 1) // m) * m


@functools.lru_cache(maxsize=None)
def _vmem_budget_and_limit():
    """Generation-aware (working-set budget, scoped-VMEM limit) in bytes."""
    phys = 0
    try:
        info = pltpu.get_tpu_info()
        phys = int(getattr(info, "vmem_capacity_bytes", 0) or 0)
    except Exception:
        phys = 0
    if phys >= (100 << 20):        # v5e / v6e: 128 MiB physical VMEM
        return 80 << 20, 100 << 20
    if phys >= (48 << 20):         # v7x: 64 MiB per TensorCore
        return 40 << 20, 52 << 20
    # Unknown generation: conservative values that are safe everywhere.
    return 24 << 20, 32 << 20


def _working_set(tb, tk, n_units, w_item, x_item, out_item):
    nbuf = 2  # BlockSpec double-buffering
    return (nbuf * 2 * n_units * tk * w_item                # W1 + W2 tiles
            + nbuf * tb * n_units * (x_item + out_item)     # x + out blocks
            + tb * n_units * 4                              # f32 accumulator scratch
            + nbuf * (HIDDEN + n_units) * 4)                # b1 + b2 (f32)


def _pick_tiles(B, n_units, w_item, x_item, out_item, budget):
    """Jointly pick (tb, tk, num_batch_tiles).

    Prefer tk = 2048 (single hidden step): weights are then fetched once and
    stay resident for the whole grid, so splitting the batch is nearly free.
    If tk must shrink, keep the batch-tile count minimal (each batch tile
    re-streams W1/W2 from HBM in that regime).
    """
    b_pad = _round_up(max(B, 1), 16)       # bf16 packs 16 sublanes per vreg
    tb_cap = min(b_pad, 2048)
    tb_sel, tk_sel = 16, 128               # last-resort fallback
    for tk in (2048, 1024, 512, 256, 128):
        tb = tb_cap
        while tb > 16 and _working_set(tb, tk, n_units, w_item, x_item, out_item) > budget:
            tb -= 16
        if _working_set(tb, tk, n_units, w_item, x_item, out_item) <= budget:
            tb_sel, tk_sel = tb, tk
            break
    # v7x megacore: when the weights are fully resident (single hidden step)
    # and the batch is big enough, use >= 2 batch tiles so both TensorCores
    # get work on the "parallel" axis.  Free w.r.t. weight traffic (nk == 1),
    # and at most one extra ~0.35us grid step on single-TC generations.
    if tk_sel == HIDDEN and b_pad >= 32 and tb_sel >= b_pad:
        tb_sel = min(tb_sel, _round_up(_cdiv(b_pad, 2), 16))
    num_bt = _cdiv(max(B, 1), tb_sel)
    return tb_sel, tk_sel, num_bt


def _mlp_kernel(x_ref, w1_ref, b1_ref, w2_ref, b2_ref, o_ref, acc_ref):
    # grid = (batch tile i [parallel], hidden tile k [reduction])
    k = pl.program_id(1)
    nk = pl.num_programs(1)
    tk = w1_ref.shape[1]

    # Seed the f32 accumulator with the second bias on the first hidden step.
    @pl.when(k == 0)
    def _():
        acc_ref[...] = jnp.broadcast_to(b2_ref[...], acc_ref.shape)

    # First linear (one hidden tile) + bias + ReLU, f32 accumulation on MXU.
    h = jnp.dot(x_ref[...], w1_ref[...], preferred_element_type=jnp.float32)
    b1_tile = b1_ref[:, pl.ds(pl.multiple_of(k * tk, tk), tk)]   # (1, tk) f32
    h = jnp.maximum(h + b1_tile, 0.0)
    # Dropout: eval-mode identity.
    # TODO(synk): training-mode stochastic dropout via pltpu.prng_* if needed.

    # Second linear: accumulate this hidden tile's partial product.
    acc_ref[...] += jnp.dot(
        h.astype(w2_ref.dtype), w2_ref[...], preferred_element_type=jnp.float32)

    # Epilogue: single cast to the final dtype, stored from the kernel.
    @pl.when(k == nk - 1)
    def _():
        o_ref[...] = acc_ref[...].astype(o_ref.dtype)


@functools.partial(jax.jit, static_argnames=("compute_dtype",))
def mlp_forward(x, w1, b1, w2, b2, *, compute_dtype=jnp.bfloat16):
    """Fused MLP forward: relu(x @ W1 + b1) @ W2 + b2 (eval-mode dropout).

    x : (B, n_units)
    w1: (n_units, 2048), b1: (2048,)   # math layout (transpose of torch weight)
    w2: (2048, n_units), b2: (n_units,)
    Matmuls run in `compute_dtype` (bf16 default, bf16 ReLU intermediate) with
    f32 accumulation on the MXU.  Pass compute_dtype=jnp.float32 for pure f32.
    """
    B, n_units = x.shape
    assert w1.shape == (n_units, HIDDEN) and b1.shape == (HIDDEN,)
    assert w2.shape == (HIDDEN, n_units) and b2.shape == (n_units,)

    out_dtype = x.dtype
    xc = x.astype(compute_dtype)
    w1c = w1.astype(compute_dtype)
    w2c = w2.astype(compute_dtype)
    b1_2d = b1.astype(jnp.float32).reshape(1, HIDDEN)
    b2_2d = b2.astype(jnp.float32).reshape(1, n_units)

    w_item = jnp.dtype(compute_dtype).itemsize
    x_item = w_item
    out_item = jnp.dtype(out_dtype).itemsize
    budget, vmem_limit = _vmem_budget_and_limit()

    tb, tk, num_bt = _pick_tiles(B, n_units, w_item, x_item, out_item, budget)
    b_total = num_bt * tb
    if b_total > B:                        # pad awkward batch sizes (sliced off below)
        xc = jnp.pad(xc, ((0, b_total - B), (0, 0)))

    nk = HIDDEN // tk
    grid = (num_bt, nk)

    # Weight HBM traffic: fetched once when nk == 1, once per batch tile otherwise.
    weight_bytes = 2 * n_units * HIDDEN * w_item * (num_bt if nk > 1 else 1)
    cost = pl.CostEstimate(
        flops=4 * b_total * HIDDEN * n_units,
        transcendentals=0,
        bytes_accessed=(weight_bytes
                        + b_total * n_units * (x_item + out_item)
                        + (HIDDEN + n_units) * 4),
    )

    out = pl.pallas_call(
        _mlp_kernel,
        out_shape=jax.ShapeDtypeStruct((b_total, n_units), out_dtype),
        grid_spec=pltpu.PrefetchScalarGridSpec(
            num_scalar_prefetch=0,
            grid=grid,
            in_specs=[
                pl.BlockSpec((tb, n_units), lambda i, k: (i, 0)),   # x (resident per batch tile)
                pl.BlockSpec((n_units, tk), lambda i, k: (0, k)),   # W1 hidden tile
                pl.BlockSpec((1, HIDDEN), lambda i, k: (0, 0)),     # full b1 (sliced in-kernel)
                pl.BlockSpec((tk, n_units), lambda i, k: (k, 0)),   # W2 hidden tile
                pl.BlockSpec((1, n_units), lambda i, k: (0, 0)),    # b2
            ],
            out_specs=pl.BlockSpec((tb, n_units), lambda i, k: (i, 0)),
            scratch_shapes=[pltpu.VMEM((tb, n_units), jnp.float32)],
        ),
        compiler_params=pltpu.CompilerParams(
            dimension_semantics=("parallel", "arbitrary"),
            vmem_limit_bytes=vmem_limit,
        ),
        cost_estimate=cost,
    )(xc, w1c, b1_2d, w2c, b2_2d)

    return out[:B] if b_total > B else out


if __name__ == "__main__":
    # Small, tile-friendly shapes: batch=8, n_units=128 (hidden fixed at 2048).
    B, n_units = 8, 128
    key = jax.random.PRNGKey(0)
    kx, k1, k2, k3, k4 = jax.random.split(key, 5)

    x = jax.random.normal(kx, (B, n_units), dtype=jnp.float32)
    # torch.nn.Linear-style init (uniform in +/- 1/sqrt(fan_in)), math layout.
    lim1 = 1.0 / (n_units ** 0.5)
    lim2 = 1.0 / (HIDDEN ** 0.5)
    w1 = jax.random.uniform(k1, (n_units, HIDDEN), jnp.float32, -lim1, lim1)
    b1 = jax.random.uniform(k2, (HIDDEN,), jnp.float32, -lim1, lim1)
    w2 = jax.random.uniform(k3, (HIDDEN, n_units), jnp.float32, -lim2, lim2)
    b2 = jax.random.uniform(k4, (n_units,), jnp.float32, -lim2, lim2)

    # Pure-f32 path: must match the f32 reference tightly.
    out_f32 = jax.block_until_ready(
        mlp_forward(x, w1, b1, w2, b2, compute_dtype=jnp.float32))
    ref_f32 = jnp.maximum(x @ w1 + b1, 0.0) @ w2 + b2
    assert out_f32.shape == (B, n_units) and out_f32.dtype == x.dtype
    assert jnp.allclose(out_f32, ref_f32, atol=1e-4, rtol=1e-4), "f32 mismatch"

    # Default bf16 (bandwidth-optimized) path.  Reference mirrors the kernel's
    # numerics: bf16-rounded operands, f32 MXU accumulation, and a bf16 ReLU
    # intermediate before the second matmul.
    out_bf = jax.block_until_ready(mlp_forward(x, w1, b1, w2, b2))
    xe = x.astype(jnp.bfloat16).astype(jnp.float32)
    w1e = w1.astype(jnp.bfloat16).astype(jnp.float32)
    w2e = w2.astype(jnp.bfloat16).astype(jnp.float32)
    he = jnp.maximum(xe @ w1e + b1, 0.0).astype(jnp.bfloat16).astype(jnp.float32)
    ref_bf = he @ w2e + b2
    assert out_bf.shape == (B, n_units) and out_bf.dtype == x.dtype
    assert jnp.allclose(out_bf, ref_bf, atol=2e-2, rtol=2e-2), "bf16 mismatch"

    print("KERNEL_OK")
</pallas_src>

<mosaic_0001>
module attributes {stable_mosaic.version = 11 : i64} {
  func.func @_mlp_kernel(%arg0: i32, %arg1: i32, %arg2: memref<16x128xf32, #tpu.memory_space<vmem>>, %arg3: memref<128x2048xf32, #tpu.memory_space<vmem>>, %arg4: memref<1x2048xf32, #tpu.memory_space<vmem>>, %arg5: memref<2048x128xf32, #tpu.memory_space<vmem>>, %arg6: memref<1x128xf32, #tpu.memory_space<vmem>>, %arg7: memref<16x128xf32, #tpu.memory_space<vmem>>, %arg8: memref<16x128xf32, #tpu.memory_space<vmem>>) attributes {dimension_semantics = [#tpu.dimension_semantics<parallel>, #tpu.dimension_semantics<arbitrary>], iteration_bounds = array<i64: 1, 1>, scalar_prefetch = 0 : i64, scratch_operands = 1 : i64, tpu.core_type = #tpu.core_type<tc>, window_params = [{transform_indices = @transform_0, window_bounds = array<i64: 16, 128>}, {transform_indices = @transform_1, window_bounds = array<i64: 128, 2048>}, {pipeline_mode = #tpu.pipeline_mode<synchronous>, transform_indices = @transform_2, window_bounds = array<i64: 1, 2048>}, {transform_indices = @transform_3, window_bounds = array<i64: 2048, 128>}, {pipeline_mode = #tpu.pipeline_mode<synchronous>, transform_indices = @transform_4, window_bounds = array<i64: 1, 128>}, {transform_indices = @transform_5, window_bounds = array<i64: 16, 128>}]} {
    %c0_i32 = arith.constant 0 : i32
    %0 = arith.cmpi eq, %arg1, %c0_i32 : i32
    %1 = arith.extui %0 : i1 to i32
    %c0_i32_0 = arith.constant 0 : i32
    %2 = arith.cmpi ne, %1, %c0_i32_0 : i32
    scf.if %2 {
      %c0_15 = arith.constant 0 : index
      %c0_16 = arith.constant 0 : index
      %22 = vector.load %arg6[%c0_15, %c0_16] : memref<1x128xf32, #tpu.memory_space<vmem>>, vector<1x128xf32>
      %23 = vector.shape_cast %22 : vector<1x128xf32> to vector<1x128xf32>
      %24 = vector.broadcast %23 : vector<1x128xf32> to vector<16x128xf32>
      %c0_17 = arith.constant 0 : index
      %c0_18 = arith.constant 0 : index
      %25 = vector.load %arg8[%c0_17, %c0_18] : memref<16x128xf32, #tpu.memory_space<vmem>>, vector<16x128xf32>
      tpu.vector_store %arg8[%c0_17, %c0_18], %24 {strides = array<i32>} : memref<16x128xf32, #tpu.memory_space<vmem>>, vector<16x128xf32>,
    } else {
    }
    %c0 = arith.constant 0 : index
    %c0_1 = arith.constant 0 : index
    %3 = vector.load %arg2[%c0, %c0_1] : memref<16x128xf32, #tpu.memory_space<vmem>>, vector<16x128xf32>
    %c0_2 = arith.constant 0 : index
    %c0_3 = arith.constant 0 : index
    %4 = vector.load %arg3[%c0_2, %c0_3] : memref<128x2048xf32, #tpu.memory_space<vmem>>, vector<128x2048xf32>
    %cst = arith.constant dense<0.000000e+00> : vector<16x2048xf32>
    %5 = tpu.matmul %3, %4, %cst {dimension_numbers = #tpu.dot_dimension_numbers<[1], [0], [0], [1], [0, 0, 1, 1], [], []>} : vector<16x128xf32>, vector<128x2048xf32>, vector<16x2048xf32> -> vector<16x2048xf32>
    %c2048_i32 = arith.constant 2048 : i32
    %6 = arith.muli %arg1, %c2048_i32 : i32
    %7 = tpu.assume_multiple %6, 2048 : i32
    %c0_4 = arith.constant 0 : index
    %8 = arith.index_cast %7 : i32 to index
    %9 = vector.load %arg4[%c0_4, %8] : memref<1x2048xf32, #tpu.memory_space<vmem>>, vector<1x2048xf32>
    %10 = vector.broadcast %9 : vector<1x2048xf32> to vector<16x2048xf32>
    %11 = arith.addf %5, %10 : vector<16x2048xf32>
    %cst_5 = arith.constant 0.000000e+00 : f32
    %12 = vector.broadcast %cst_5 : f32 to vector<16x2048xf32>
    %13 = arith.maximumf %11, %12 : vector<16x2048xf32>
    %c0_6 = arith.constant 0 : index
    %c0_7 = arith.constant 0 : index
    %14 = vector.load %arg8[%c0_6, %c0_7] : memref<16x128xf32, #tpu.memory_space<vmem>>, vector<16x128xf32>
    %c0_8 = arith.constant 0 : index
    %c0_9 = arith.constant 0 : index
    %15 = vector.load %arg5[%c0_8, %c0_9] : memref<2048x128xf32, #tpu.memory_space<vmem>>, vector<2048x128xf32>
    %cst_10 = arith.constant dense<0.000000e+00> : vector<16x128xf32>
    %16 = tpu.matmul %13, %15, %cst_10 {dimension_numbers = #tpu.dot_dimension_numbers<[1], [0], [0], [1], [0, 0, 1, 1], [], []>} : vector<16x2048xf32>, vector<2048x128xf32>, vector<16x128xf32> -> vector<16x128xf32>
    %17 = arith.addf %14, %16 : vector<16x128xf32>
    %c0_11 = arith.constant 0 : index
    %c0_12 = arith.constant 0 : index
    %18 = vector.load %arg8[%c0_11, %c0_12] : memref<16x128xf32, #tpu.memory_space<vmem>>, vector<16x128xf32>
    tpu.vector_store %arg8[%c0_11, %c0_12], %17 {strides = array<i32>} : memref<16x128xf32, #tpu.memory_space<vmem>>, vector<16x128xf32>,
    %c0_i32_13 = arith.constant 0 : i32
    %19 = arith.cmpi eq, %arg1, %c0_i32_13 : i32
    %20 = arith.extui %19 : i1 to i32
    %c0_i32_14 = arith.constant 0 : i32
    %21 = arith.cmpi ne, %20, %c0_i32_14 : i32
    scf.if %21 {
      %c0_15 = arith.constant 0 : index
      %c0_16 = arith.constant 0 : index
      %22 = vector.load %arg8[%c0_15, %c0_16] : memref<16x128xf32, #tpu.memory_space<vmem>>, vector<16x128xf32>
      %c0_17 = arith.constant 0 : index
      %c0_18 = arith.constant 0 : index
      %23 = vector.load %arg7[%c0_17, %c0_18] : memref<16x128xf32, #tpu.memory_space<vmem>>, vector<16x128xf32>
      tpu.vector_store %arg7[%c0_17, %c0_18], %22 {strides = array<i32>} : memref<16x128xf32, #tpu.memory_space<vmem>>, vector<16x128xf32>,
    } else {
    }
    return
  }
  func.func @transform_0(%arg0: i32, %arg1: i32) -> (i32, i32) {
    %c0_i32 = arith.constant 0 : i32
    %c0_i32_0 = arith.constant 0 : i32
    return %arg0, %c0_i32 : i32, i32
  }
  func.func @transform_1(%arg0: i32, %arg1: i32) -> (i32, i32) {
    %c0_i32 = arith.constant 0 : i32
    %c0_i32_0 = arith.constant 0 : i32
    return %c0_i32, %arg1 : i32, i32
  }
  func.func @transform_2(%arg0: i32, %arg1: i32) -> (i32, i32) {
    %c0_i32 = arith.constant 0 : i32
    %c0_i32_0 = arith.constant 0 : i32
    %c0_i32_1 = arith.constant 0 : i32
    return %c0_i32, %c0_i32_0 : i32, i32
  }
  func.func @transform_3(%arg0: i32, %arg1: i32) -> (i32, i32) {
    %c0_i32 = arith.constant 0 : i32
    %c0_i32_0 = arith.constant 0 : i32
    return %arg1, %c0_i32 : i32, i32
  }
  func.func @transform_4(%arg0: i32, %arg1: i32) -> (i32, i32) {
    %c0_i32 = arith.constant 0 : i32
    %c0_i32_0 = arith.constant 0 : i32
    %c0_i32_1 = arith.constant 0 : i32
    return %c0_i32, %c0_i32_0 : i32, i32
  }
  func.func @transform_5(%arg0: i32, %arg1: i32) -> (i32, i32) {
    %c0_i32 = arith.constant 0 : i32
    %c0_i32_0 = arith.constant 0 : i32
    return %arg0, %c0_i32 : i32, i32
  }
}

</mosaic_0001>

<bundles_post_ra>
// kernel: mlp_forward.1
= control target key start
LH: loop header
LB: loop body
LE: loop exit
PB: predicated region body
PF: predicated region fallthrough
CT: control target
= control target key end

     0   :  { %10 = vsyncpa [#allocation4], 0  ;;  %s1620_s0 = inlined_call_operand.vmem [shape: f32[16,128], index: 0, kind: input, shape index: {}]   ;;  %s1621_s1 = inlined_call_operand.hbm [shape: f32[128,2048], index: 1, kind: input, shape index: {}]   ;;  %s1622_s2 = inlined_call_operand.vmem [shape: f32[1,2048], index: 2, kind: input, shape index: {}]   ;;  %s1623_s3 = inlined_call_operand.hbm [shape: f32[2048,128], index: 3, kind: input, shape index: {}]   ;;  %s1624_s4 = inlined_call_operand.vmem [shape: f32[1,128], index: 4, kind: input, shape index: {}]   ;;  %s1625_s5 = inlined_call_operand.vmem [shape: f32[16,128], index: 5, kind: output, shape index: {}]  }
   0x1   :  { %s18_s20 = sshll.u32 %s1621_s1, 4  ;;  %s19_s20 = int_to_ptr.hbm [resolvable:$true] %s18_s20 }
   0x2   :  { %11 = vsyncpa [#allocation6], 0  ;;  %s1462_s21 = smov [#allocation3]   ;;  %s33_s25 = sshll.u32 %s1623_s3, 4  ;;  %s34_s25 = int_to_ptr.hbm [resolvable:$true] %s33_s25 }
   0x3   :  { %s20_s22 = sshll.u32 %s1462_s21, 4  ;;  %s1463_s26 = smov 2048   ;;  %s21_s22 = int_to_ptr.vmem [resolvable:$true] %s20_s22 }
   0x4   :  { %s1464_s27 = smov 128   ;;  %s1465_s28 = smov [#allocation5]  }
   0x5   :  { %26 = dma.hbm_to_vmem [thread:$0]  %s19_s20, 32768, %s21_s22, [#allocation4], %s1463_s26, %s1463_s26, %s1464_s27  }
   0x6   :  { %s35_s29 = sshll.u32 %s1465_s28, 4  ;;  %s1466_s30 = smov 8   ;;  %s36_s29 = int_to_ptr.vmem [resolvable:$true] %s35_s29 }
   0x7   :  { %41 = dma.hbm_to_vmem [thread:$0]  %s34_s25, 32768, %s36_s29, [#allocation6], %s1464_s27, %s1464_s27, %s1466_s30  }
   0x8   :  { %1458 = dma.done.wait [#allocation4], 32768  }
   0x9   :  { %1459 = vsyncadd [#allocation4], 4294934528 }
   0xa   :  { %1460 = dma.done.wait [#allocation6], 32768  }
   0xb   :  { %1461 = vsyncadd [#allocation6], 4294934528  ;;  %v304_v0 = vld [vmem:[#allocation3 + $0x780] sm:$0xff]  ;;  %v306_v1 = vld [vmem:[#allocation3 + $0x790] sm:$0xff] }
   0xc   :  { %v288_v2 = vld [vmem:[#allocation3 + $0x700] sm:$0xff]  ;;  %360 = vmatpush.msra.mxu0 %v304_v0  ;;  %406 = vmatpush.msra.mxu2 %v306_v1  ;;  %v305_v3 = vld [vmem:[#allocation3 + $0x788] sm:$0xff]  ;;  %v290_v4 = vld [vmem:[#allocation3 + $0x710] sm:$0xff] }
   0xd   :  { %v307_v5 = vld [vmem:[#allocation3 + $0x798] sm:$0xff]  ;;  %383 = vmatpush.msra.mxu1 %v305_v3  ;;  %v272_v6 = vld [vmem:[#allocation3 + $0x680] sm:$0xff]  ;;  %v289_v7 = vld [vmem:[#allocation3 + $0x708] sm:$0xff] }
   0xe   :  { %429 = vmatpush.msra.mxu3 %v307_v5  ;;  %v274_v8 = vld [vmem:[#allocation3 + $0x690] sm:$0xff]  ;;  %361 = vmatpush.msra.mxu0 %v288_v2  ;;  %v291_v9 = vld [vmem:[#allocation3 + $0x718] sm:$0xff]  ;;  %v273_v10 = vld [vmem:[#allocation3 + $0x688] sm:$0xff] }
   0xf   :  { %407 = vmatpush.msra.mxu2 %v290_v4  ;;  %384 = vmatpush.msra.mxu1 %v289_v7  ;;  %v256_v11 = vld [vmem:[#allocation3 + $0x600] sm:$0xff]  ;;  %v258_v12 = vld [vmem:[#allocation3 + $0x610] sm:$0xff]  ;;  %v275_v13 = vld [vmem:[#allocation3 + $0x698] sm:$0xff] }
  0x10   :  { %430 = vmatpush.msra.mxu3 %v291_v9  ;;  %362 = vmatpush.msra.mxu0 %v272_v6  ;;  %v257_v14 = vld [vmem:[#allocation3 + $0x608] sm:$0xff]  ;;  %v259_v15 = vld [vmem:[#allocation3 + $0x618] sm:$0xff]  ;;  %v240_v16 = vld [vmem:[#allocation3 + $0x580] sm:$0xff] }
  0x11   :  { %408 = vmatpush.msra.mxu2 %v274_v8  ;;  %385 = vmatpush.msra.mxu1 %v273_v10  ;;  %v242_v17 = vld [vmem:[#allocation3 + $0x590] sm:$0xff]  ;;  %v241_v18 = vld [vmem:[#allocation3 + $0x588] sm:$0xff]  ;;  %v243_v19 = vld [vmem:[#allocation3 + $0x598] sm:$0xff] }
  0x12   :  { %431 = vmatpush.msra.mxu3 %v275_v13  ;;  %363 = vmatpush.msra.mxu0 %v256_v11  ;;  %v224_v20 = vld [vmem:[#allocation3 + $0x500] sm:$0xff]  ;;  %v226_v21 = vld [vmem:[#allocation3 + $0x510] sm:$0xff]  ;;  %v225_v22 = vld [vmem:[#allocation3 + $0x508] sm:$0xff] }
  0x13   :  { %409 = vmatpush.msra.mxu2 %v258_v12  ;;  %386 = vmatpush.msra.mxu1 %v257_v14  ;;  %v227_v23 = vld [vmem:[#allocation3 + $0x518] sm:$0xff]  ;;  %v208_v24 = vld [vmem:[#allocation3 + $0x480] sm:$0xff]  ;;  %v210_v25 = vld [vmem:[#allocation3 + $0x490] sm:$0xff] }
  0x14   :  { %432 = vmatpush.msra.mxu3 %v259_v15  ;;  %364 = vmatpush.msra.mxu0 %v240_v16  ;;  %v209_v26 = vld [vmem:[#allocation3 + $0x488] sm:$0xff]  ;;  %v211_v27 = vld [vmem:[#allocation3 + $0x498] sm:$0xff]  ;;  %v192_v28 = vld [vmem:[#allocation3 + $0x400] sm:$0xff] }
  0x15   :  { %410 = vmatpush.msra.mxu2 %v242_v17  ;;  %387 = vmatpush.msra.mxu1 %v241_v18  ;;  %v194_v29 = vld [vmem:[#allocation3 + $0x410] sm:$0xff]  ;;  %v193_v30 = vld [vmem:[#allocation3 + $0x408] sm:$0xff]  ;;  %v195_v31 = vld [vmem:[#allocation3 + $0x418] sm:$0xff] }
  0x16   :  { %433 = vmatpush.msra.mxu3 %v243_v19  ;;  %365 = vmatpush.msra.mxu0 %v224_v20  ;;  %v176_v32 = vld [vmem:[#allocation3 + $0x380] sm:$0xff]  ;;  %v178_v33 = vld [vmem:[#allocation3 + $0x390] sm:$0xff]  ;;  %v177_v34 = vld [vmem:[#allocation3 + $0x388] sm:$0xff] }
  0x17   :  { %411 = vmatpush.msra.mxu2 %v226_v21  ;;  %388 = vmatpush.msra.mxu1 %v225_v22  ;;  %v179_v35 = vld [vmem:[#allocation3 + $0x398] sm:$0xff]  ;;  %v160_v36 = vld [vmem:[#allocation3 + $0x300] sm:$0xff]  ;;  %v162_v37 = vld [vmem:[#allocation3 + $0x310] sm:$0xff] }
  0x18   :  { %434 = vmatpush.msra.mxu3 %v227_v23  ;;  %366 = vmatpush.msra.mxu0 %v208_v24  ;;  %v161_v38 = vld [vmem:[#allocation3 + $0x308] sm:$0xff]  ;;  %v163_v39 = vld [vmem:[#allocation3 + $0x318] sm:$0xff]  ;;  %v144_v40 = vld [vmem:[#allocation3 + $0x280] sm:$0xff] }
  0x19   :  { %412 = vmatpush.msra.mxu2 %v210_v25  ;;  %389 = vmatpush.msra.mxu1 %v209_v26  ;;  %v146_v41 = vld [vmem:[#allocation3 + $0x290] sm:$0xff]  ;;  %v145_v42 = vld [vmem:[#allocation3 + $0x288] sm:$0xff]  ;;  %v147_v43 = vld [vmem:[#allocation3 + $0x298] sm:$0xff] }
  0x1a   :  { %435 = vmatpush.msra.mxu3 %v211_v27  ;;  %367 = vmatpush.msra.mxu0 %v192_v28  ;;  %v128_v44 = vld [vmem:[#allocation3 + $0x200] sm:$0xff]  ;;  %v130_v45 = vld [vmem:[#allocation3 + $0x210] sm:$0xff]  ;;  %v129_v46 = vld [vmem:[#allocation3 + $0x208] sm:$0xff] }
  0x1b   :  { %413 = vmatpush.msra.mxu2 %v194_v29  ;;  %390 = vmatpush.msra.mxu1 %v193_v30  ;;  %v131_v47 = vld [vmem:[#allocation3 + $0x218] sm:$0xff]  ;;  %v112_v48 = vld [vmem:[#allocation3 + $0x180] sm:$0xff]  ;;  %v114_v49 = vld [vmem:[#allocation3 + $0x190] sm:$0xff] }
  0x1c   :  { %436 = vmatpush.msra.mxu3 %v195_v31  ;;  %368 = vmatpush.msra.mxu0 %v176_v32  ;;  %v113_v50 = vld [vmem:[#allocation3 + $0x188] sm:$0xff]  ;;  %v115_v51 = vld [vmem:[#allocation3 + $0x198] sm:$0xff]  ;;  %v96_v52 = vld [vmem:[#allocation3 + $0x100] sm:$0xff] }
  0x1d   :  { %414 = vmatpush.msra.mxu2 %v178_v33  ;;  %391 = vmatpush.msra.mxu1 %v177_v34  ;;  %v98_v53 = vld [vmem:[#allocation3 + $0x110] sm:$0xff]  ;;  %v97_v54 = vld [vmem:[#allocation3 + $0x108] sm:$0xff]  ;;  %v99_v55 = vld [vmem:[#allocation3 + $0x118] sm:$0xff] }
  0x1e   :  { %437 = vmatpush.msra.mxu3 %v179_v35  ;;  %369 = vmatpush.msra.mxu0 %v160_v36  ;;  %v80_v56 = vld [vmem:[#allocation3 + $0x80] sm:$0xff]  ;;  %v82_v57 = vld [vmem:[#allocation3 + $0x90] sm:$0xff]  ;;  %v81_v58 = vld [vmem:[#allocation3 + $0x88] sm:$0xff] }
  0x1f   :  { %415 = vmatpush.msra.mxu2 %v162_v37  ;;  %392 = vmatpush.msra.mxu1 %v161_v38  ;;  %v83_v59 = vld [vmem:[#allocation3 + $0x98] sm:$0xff]  ;;  %v64_v60 = vld [vmem:[#allocation3] sm:$0xff]  ;;  %v66_v61 = vld [vmem:[#allocation3 + $0x10] sm:$0xff] }
  0x20   :  { %438 = vmatpush.msra.mxu3 %v163_v39  ;;  %370 = vmatpush.msra.mxu0 %v144_v40  ;;  %v308_v62 = vld [vmem:[#allocation3 + $0x7a0] sm:$0xff]  ;;  %v310_v63 = vld [vmem:[#allocation3 + $0x7b0] sm:$0xff]  ;;  %v65_v0 = vld [vmem:[#allocation3 + $0x8] sm:$0xff] }
  0x21   :  { %416 = vmatpush.msra.mxu2 %v146_v41  ;;  %393 = vmatpush.msra.mxu1 %v145_v42  ;;  %v67_v1 = vld [vmem:[#allocation3 + $0x18] sm:$0xff]  ;;  %v292_v2 = vld [vmem:[#allocation3 + $0x720] sm:$0xff]  ;;  %v309_v3 = vld [vmem:[#allocation3 + $0x7a8] sm:$0xff] }
  0x22   :  { %439 = vmatpush.msra.mxu3 %v147_v43  ;;  %371 = vmatpush.msra.mxu0 %v128_v44  ;;  %v294_v4 = vld [vmem:[#allocation3 + $0x730] sm:$0xff]  ;;  %v311_v5 = vld [vmem:[#allocation3 + $0x7b8] sm:$0xff]  ;;  %v276_v6 = vld [vmem:[#allocation3 + $0x6a0] sm:$0xff] }
  0x23   :  { %417 = vmatpush.msra.mxu2 %v130_v45  ;;  %394 = vmatpush.msra.mxu1 %v129_v46  ;;  %v293_v7 = vld [vmem:[#allocation3 + $0x728] sm:$0xff]  ;;  %v278_v8 = vld [vmem:[#allocation3 + $0x6b0] sm:$0xff]  ;;  %v295_v9 = vld [vmem:[#allocation3 + $0x738] sm:$0xff] }
  0x24   :  { %440 = vmatpush.msra.mxu3 %v131_v47  ;;  %372 = vmatpush.msra.mxu0 %v112_v48  ;;  %v260_v10 = vld [vmem:[#allocation3 + $0x620] sm:$0xff]  ;;  %v277_v11 = vld [vmem:[#allocation3 + $0x6a8] sm:$0xff]  ;;  %v262_v12 = vld [vmem:[#allocation3 + $0x630] sm:$0xff] }
  0x25   :  { %418 = vmatpush.msra.mxu2 %v114_v49  ;;  %395 = vmatpush.msra.mxu1 %v113_v50  ;;  %v279_v13 = vld [vmem:[#allocation3 + $0x6b8] sm:$0xff]  ;;  %v244_v14 = vld [vmem:[#allocation3 + $0x5a0] sm:$0xff]  ;;  %v261_v15 = vld [vmem:[#allocation3 + $0x628] sm:$0xff] }
  0x26   :  { %441 = vmatpush.msra.mxu3 %v115_v51  ;;  %373 = vmatpush.msra.mxu0 %v96_v52  ;;  %v246_v16 = vld [vmem:[#allocation3 + $0x5b0] sm:$0xff]  ;;  %v263_v17 = vld [vmem:[#allocation3 + $0x638] sm:$0xff]  ;;  %v228_v18 = vld [vmem:[#allocation3 + $0x520] sm:$0xff] }
  0x27   :  { %419 = vmatpush.msra.mxu2 %v98_v53  ;;  %396 = vmatpush.msra.mxu1 %v97_v54  ;;  %v245_v19 = vld [vmem:[#allocation3 + $0x5a8] sm:$0xff]  ;;  %v230_v20 = vld [vmem:[#allocation3 + $0x530] sm:$0xff]  ;;  %v247_v21 = vld [vmem:[#allocation3 + $0x5b8] sm:$0xff] }
  0x28   :  { %442 = vmatpush.msra.mxu3 %v99_v55  ;;  %374 = vmatpush.msra.mxu0 %v80_v56  ;;  %v212_v22 = vld [vmem:[#allocation3 + $0x4a0] sm:$0xff]  ;;  %v229_v23 = vld [vmem:[#allocation3 + $0x528] sm:$0xff]  ;;  %v214_v24 = vld [vmem:[#allocation3 + $0x4b0] sm:$0xff] }
  0x29   :  { %420 = vmatpush.msra.mxu2 %v82_v57  ;;  %397 = vmatpush.msra.mxu1 %v81_v58  ;;  %v231_v25 = vld [vmem:[#allocation3 + $0x538] sm:$0xff]  ;;  %v196_v26 = vld [vmem:[#allocation3 + $0x420] sm:$0xff]  ;;  %v213_v27 = vld [vmem:[#allocation3 + $0x4a8] sm:$0xff] }
  0x2a   :  { %443 = vmatpush.msra.mxu3 %v83_v59  ;;  %375 = vmatpush.msra.mxu0 %v64_v60  ;;  %v198_v28 = vld [vmem:[#allocation3 + $0x430] sm:$0xff]  ;;  %v215_v29 = vld [vmem:[#allocation3 + $0x4b8] sm:$0xff]  ;;  %v180_v30 = vld [vmem:[#allocation3 + $0x3a0] sm:$0xff] }
  0x2b   :  { %421 = vmatpush.msra.mxu2 %v66_v61  ;;  %398 = vmatpush.msra.mxu1 %v65_v0  ;;  %v197_v31 = vld [vmem:[#allocation3 + $0x428] sm:$0xff]  ;;  %v182_v32 = vld [vmem:[#allocation3 + $0x3b0] sm:$0xff]  ;;  %v199_v33 = vld [vmem:[#allocation3 + $0x438] sm:$0xff] }
  0x2c   :  { %452 = vmatpush.msrb.mxu0 %v308_v62  ;;  %444 = vmatpush.msra.mxu3 %v67_v1  ;;  %v164_v34 = vld [vmem:[#allocation3 + $0x320] sm:$0xff]  ;;  %v181_v35 = vld [vmem:[#allocation3 + $0x3a8] sm:$0xff]  ;;  %v166_v36 = vld [vmem:[#allocation3 + $0x330] sm:$0xff] }
  0x2d   :  { %498 = vmatpush.msrb.mxu2 %v310_v63  ;;  %475 = vmatpush.msrb.mxu1 %v309_v3  ;;  %v183_v37 = vld [vmem:[#allocation3 + $0x3b8] sm:$0xff]  ;;  %v148_v38 = vld [vmem:[#allocation3 + $0x2a0] sm:$0xff]  ;;  %v165_v39 = vld [vmem:[#allocation3 + $0x328] sm:$0xff] }
  0x2e   :  { %453 = vmatpush.msrb.mxu0 %v292_v2  ;;  %521 = vmatpush.msrb.mxu3 %v311_v5  ;;  %v150_v40 = vld [vmem:[#allocation3 + $0x2b0] sm:$0xff]  ;;  %v167_v41 = vld [vmem:[#allocation3 + $0x338] sm:$0xff]  ;;  %v1506_v42 = vld [vmem:[%s1620_s0] sm:$0xff] }
  0x2f   :  { %499 = vmatpush.msrb.mxu2 %v294_v4  ;;  %476 = vmatpush.msrb.mxu1 %v293_v7  ;;  %v132_v43 = vld [vmem:[#allocation3 + $0x220] sm:$0xff]  ;;  %v149_v44 = vld [vmem:[#allocation3 + $0x2a8] sm:$0xff]  ;;  %v134_v45 = vld [vmem:[#allocation3 + $0x230] sm:$0xff] }
  0x30   :  { %454 = vmatpush.msrb.mxu0 %v276_v6  ;;  %522 = vmatpush.msrb.mxu3 %v295_v9  ;;  %v151_v46 = vld [vmem:[#allocation3 + $0x2b8] sm:$0xff]  ;;  %v116_v47 = vld [vmem:[#allocation3 + $0x1a0] sm:$0xff]  ;;  %v133_v48 = vld [vmem:[#allocation3 + $0x228] sm:$0xff] }
  0x31   :  { %500 = vmatpush.msrb.mxu2 %v278_v8  ;;  %477 = vmatpush.msrb.mxu1 %v277_v11  ;;  %v118_v49 = vld [vmem:[#allocation3 + $0x1b0] sm:$0xff]  ;;  %v135_v50 = vld [vmem:[#allocation3 + $0x238] sm:$0xff]  ;;  %v100_v51 = vld [vmem:[#allocation3 + $0x120] sm:$0xff] }
  0x32   :  { %455 = vmatpush.msrb.mxu0 %v260_v10  ;;  %523 = vmatpush.msrb.mxu3 %v279_v13  ;;  %v117_v52 = vld [vmem:[#allocation3 + $0x1a8] sm:$0xff]  ;;  %v102_v53 = vld [vmem:[#allocation3 + $0x130] sm:$0xff]  ;;  %v119_v54 = vld [vmem:[#allocation3 + $0x1b8] sm:$0xff] }
  0x33   :  { %501 = vmatpush.msrb.mxu2 %v262_v12  ;;  %478 = vmatpush.msrb.mxu1 %v261_v15  ;;  %v84_v55 = vld [vmem:[#allocation3 + $0xa0] sm:$0xff]  ;;  %v101_v56 = vld [vmem:[#allocation3 + $0x128] sm:$0xff]  ;;  %v86_v57 = vld [vmem:[#allocation3 + $0xb0] sm:$0xff] }
  0x34   :  { %456 = vmatpush.msrb.mxu0 %v244_v14  ;;  %524 = vmatpush.msrb.mxu3 %v263_v17  ;;  %v103_v58 = vld [vmem:[#allocation3 + $0x138] sm:$0xff]  ;;  %v1513_v59 = vld [vmem:[%s1620_s0 + $0x8] sm:$0xff]  ;;  %v68_v60 = vld [vmem:[#allocation3 + $0x20] sm:$0xff] }
  0x35   :  { %502 = vmatpush.msrb.mxu2 %v246_v16  ;;  %479 = vmatpush.msrb.mxu1 %v245_v19  ;;  %v85_v61 = vld [vmem:[#allocation3 + $0xa8] sm:$0xff]  ;;  %v70_v62 = vld [vmem:[#allocation3 + $0x30] sm:$0xff]  ;;  %v87_v63 = vld [vmem:[#allocation3 + $0xb8] sm:$0xff] }
  0x36   :  { %457 = vmatpush.msrb.mxu0 %v228_v18  ;;  %525 = vmatpush.msrb.mxu3 %v247_v21  ;;  %v312_v0 = vld [vmem:[#allocation3 + $0x7c0] sm:$0xff]  ;;  %v314_v1 = vld [vmem:[#allocation3 + $0x7d0] sm:$0xff]  ;;  %v69_v2 = vld [vmem:[#allocation3 + $0x28] sm:$0xff] }
  0x37   :  { %503 = vmatpush.msrb.mxu2 %v230_v20  ;;  %480 = vmatpush.msrb.mxu1 %v229_v23  ;;  %v71_v3 = vld [vmem:[#allocation3 + $0x38] sm:$0xff]  ;;  %v296_v4 = vld [vmem:[#allocation3 + $0x740] sm:$0xff]  ;;  %v313_v5 = vld [vmem:[#allocation3 + $0x7c8] sm:$0xff] }
  0x38   :  { %458 = vmatpush.msrb.mxu0 %v212_v22  ;;  %526 = vmatpush.msrb.mxu3 %v231_v25  ;;  %v298_v6 = vld [vmem:[#allocation3 + $0x750] sm:$0xff]  ;;  %v315_v7 = vld [vmem:[#allocation3 + $0x7d8] sm:$0xff]  ;;  %v280_v8 = vld [vmem:[#allocation3 + $0x6c0] sm:$0xff] }
  0x39   :  { %504 = vmatpush.msrb.mxu2 %v214_v24  ;;  %481 = vmatpush.msrb.mxu1 %v213_v27  ;;  %v297_v9 = vld [vmem:[#allocation3 + $0x748] sm:$0xff]  ;;  %v282_v10 = vld [vmem:[#allocation3 + $0x6d0] sm:$0xff]  ;;  %v299_v11 = vld [vmem:[#allocation3 + $0x758] sm:$0xff] }
  0x3a   :  { %459 = vmatpush.msrb.mxu0 %v196_v26  ;;  %527 = vmatpush.msrb.mxu3 %v215_v29  ;;  %v264_v12 = vld [vmem:[#allocation3 + $0x640] sm:$0xff]  ;;  %v281_v13 = vld [vmem:[#allocation3 + $0x6c8] sm:$0xff]  ;;  %v266_v14 = vld [vmem:[#allocation3 + $0x650] sm:$0xff] }
  0x3b   :  { %505 = vmatpush.msrb.mxu2 %v198_v28  ;;  %482 = vmatpush.msrb.mxu1 %v197_v31  ;;  %v283_v15 = vld [vmem:[#allocation3 + $0x6d8] sm:$0xff]  ;;  %v248_v16 = vld [vmem:[#allocation3 + $0x5c0] sm:$0xff]  ;;  %v265_v17 = vld [vmem:[#allocation3 + $0x648] sm:$0xff] }
  0x3c   :  { %460 = vmatpush.msrb.mxu0 %v180_v30  ;;  %528 = vmatpush.msrb.mxu3 %v199_v33  ;;  %v250_v18 = vld [vmem:[#allocation3 + $0x5d0] sm:$0xff]  ;;  %v267_v19 = vld [vmem:[#allocation3 + $0x658] sm:$0xff]  ;;  %v232_v20 = vld [vmem:[#allocation3 + $0x540] sm:$0xff] }
  0x3d   :  { %506 = vmatpush.msrb.mxu2 %v182_v32  ;;  %483 = vmatpush.msrb.mxu1 %v181_v35  ;;  %v249_v21 = vld [vmem:[#allocation3 + $0x5c8] sm:$0xff]  ;;  %v234_v22 = vld [vmem:[#allocation3 + $0x550] sm:$0xff]  ;;  %v251_v23 = vld [vmem:[#allocation3 + $0x5d8] sm:$0xff] }
  0x3e   :  { %461 = vmatpush.msrb.mxu0 %v164_v34  ;;  %529 = vmatpush.msrb.mxu3 %v183_v37  ;;  %v216_v24 = vld [vmem:[#allocation3 + $0x4c0] sm:$0xff]  ;;  %v233_v25 = vld [vmem:[#allocation3 + $0x548] sm:$0xff]  ;;  %v218_v26 = vld [vmem:[#allocation3 + $0x4d0] sm:$0xff] }
  0x3f   :  { %507 = vmatpush.msrb.mxu2 %v166_v36  ;;  %484 = vmatpush.msrb.mxu1 %v165_v39  ;;  %v235_v27 = vld [vmem:[#allocation3 + $0x558] sm:$0xff]  ;;  %v217_v28 = vld [vmem:[#allocation3 + $0x4c8] sm:$0xff]  ;;  %v200_v29 = vld [vmem:[#allocation3 + $0x440] sm:$0xff] }
  0x40   :  { %462 = vmatpush.msrb.mxu0 %v148_v38  ;;  %530 = vmatpush.msrb.mxu3 %v167_v41  ;;  %v202_v30 = vld [vmem:[#allocation3 + $0x450] sm:$0xff]  ;;  %v219_v31 = vld [vmem:[#allocation3 + $0x4d8] sm:$0xff]  ;;  %v184_v32 = vld [vmem:[#allocation3 + $0x3c0] sm:$0xff] }
  0x41   :  { %508 = vmatpush.msrb.mxu2 %v150_v40  ;;  %485 = vmatpush.msrb.mxu1 %v149_v44  ;;  %v201_v33 = vld [vmem:[#allocation3 + $0x448] sm:$0xff]  ;;  %v186_v34 = vld [vmem:[#allocation3 + $0x3d0] sm:$0xff]  ;;  %v203_v35 = vld [vmem:[#allocation3 + $0x458] sm:$0xff] }
  0x42   :  { %422 = vmatmul.f32.vlgmr.msra.gmra.mxu2 %v1506_v42  ;;  %463 = vmatpush.msrb.mxu0 %v132_v43  ;;  %v168_v36 = vld [vmem:[#allocation3 + $0x340] sm:$0xff]  ;;  %v185_v37 = vld [vmem:[#allocation3 + $0x3c8] sm:$0xff]  ;;  %v170_v38 = vld [vmem:[#allocation3 + $0x350] sm:$0xff] }
  0x43   :  { %509 = vmatpush.msrb.mxu2 %v134_v45  ;;  %531 = vmatpush.msrb.mxu3 %v151_v46  ;;  %v187_v39 = vld [vmem:[#allocation3 + $0x3d8] sm:$0xff]  ;;  %v152_v40 = vld [vmem:[#allocation3 + $0x2c0] sm:$0xff]  ;;  %v169_v41 = vld [vmem:[#allocation3 + $0x348] sm:$0xff] }
  0x44   :  { %464 = vmatpush.msrb.mxu0 %v116_v47  ;;  %445 = vmatmul.f32.vlgmr.msra.gmra.mxu3 %v1506_v42  ;;  %v154_v43 = vld [vmem:[#allocation3 + $0x2d0] sm:$0xff]  ;;  %v171_v44 = vld [vmem:[#allocation3 + $0x358] sm:$0xff]  ;;  %v136_v45 = vld [vmem:[#allocation3 + $0x240] sm:$0xff] }
  0x45   :  { %486 = vmatpush.msrb.mxu1 %v133_v48  ;;  %510 = vmatpush.msrb.mxu2 %v118_v49  ;;  %v153_v46 = vld [vmem:[#allocation3 + $0x2c8] sm:$0xff]  ;;  %v138_v47 = vld [vmem:[#allocation3 + $0x250] sm:$0xff]  ;;  %v155_v48 = vld [vmem:[#allocation3 + $0x2d8] sm:$0xff] }
  0x46   :  { %532 = vmatpush.msrb.mxu3 %v135_v50  ;;  %465 = vmatpush.msrb.mxu0 %v100_v51  ;;  %v120_v49 = vld [vmem:[#allocation3 + $0x1c0] sm:$0xff]  ;;  %v137_v50 = vld [vmem:[#allocation3 + $0x248] sm:$0xff]  ;;  %v122_v51 = vld [vmem:[#allocation3 + $0x1d0] sm:$0xff] }
  0x47   :  { %487 = vmatpush.msrb.mxu1 %v117_v52  ;;  %511 = vmatpush.msrb.mxu2 %v102_v53  ;;  %v139_v52 = vld [vmem:[#allocation3 + $0x258] sm:$0xff]  ;;  %v104_v53 = vld [vmem:[#allocation3 + $0x140] sm:$0xff] }
  0x48   :  { %533 = vmatpush.msrb.mxu3 %v119_v54  ;;  %466 = vmatpush.msrb.mxu0 %v84_v55  ;;  %v121_v54 = vld [vmem:[#allocation3 + $0x1c8] sm:$0xff]  ;;  %v106_v55 = vld [vmem:[#allocation3 + $0x150] sm:$0xff] }
  0x49   :  { %488 = vmatpush.msrb.mxu1 %v101_v56  ;;  %512 = vmatpush.msrb.mxu2 %v86_v57  ;;  %v123_v56 = vld [vmem:[#allocation3 + $0x1d8] sm:$0xff]  ;;  %v88_v57 = vld [vmem:[#allocation3 + $0xc0] sm:$0xff] }
  0x4a   :  { %534 = vmatpush.msrb.mxu3 %v103_v58  ;;  %376 = vmatmul.f32.vlgmr.msra.gmra.mxu0 %v1506_v42  ;;  %v105_v58 = vld [vmem:[#allocation3 + $0x148] sm:$0xff] }
  0x4b   :  { %425 = vmatmul.f32.gmra.mxu2 %v1513_v59  ;;  %467 = vmatpush.msrb.mxu0 %v68_v60  ;;  %v90_v60 = vld [vmem:[#allocation3 + $0xd0] sm:$0xff] }
  0x4c   :  { %489 = vmatpush.msrb.mxu1 %v85_v61  ;;  %513 = vmatpush.msrb.mxu2 %v70_v62  ;;  %v107_v61 = vld [vmem:[#allocation3 + $0x158] sm:$0xff]  ;;  %v72_v62 = vld [vmem:[#allocation3 + $0x40] sm:$0xff] }
  0x4d   :  { %535 = vmatpush.msrb.mxu3 %v87_v63  ;;  %399 = vmatmul.f32.vlgmr.msra.gmra.mxu1 %v1506_v42  ;;  %v89_v63 = vld [vmem:[#allocation3 + $0xc8] sm:$0xff] }
  0x4e   :  { %448 = vmatmul.f32.gmra.mxu3 %v1513_v59  ;;  %544 = vmatpush.msra.mxu0 %v312_v0  ;;  %v74_v0 = vld [vmem:[#allocation3 + $0x50] sm:$0xff] }
  0x4f   :  { %590 = vmatpush.msra.mxu2 %v314_v1  ;;  %490 = vmatpush.msrb.mxu1 %v69_v2  ;;  %v91_v1 = vld [vmem:[#allocation3 + $0xd8] sm:$0xff]  ;;  %v316_v2 = vld [vmem:[#allocation3 + $0x7e0] sm:$0xff] }
  0x50   :  { %536 = vmatpush.msrb.mxu3 %v71_v3  ;;  %545 = vmatpush.msra.mxu0 %v296_v4  ;;  %v318_v3 = vld [vmem:[#allocation3 + $0x7f0] sm:$0xff]  ;;  %v73_v4 = vld [vmem:[#allocation3 + $0x48] sm:$0xff] }
  0x51   :  { %567 = vmatpush.msra.mxu1 %v313_v5  ;;  %591 = vmatpush.msra.mxu2 %v298_v6  ;;  %v75_v5 = vld [vmem:[#allocation3 + $0x58] sm:$0xff]  ;;  %v300_v6 = vld [vmem:[#allocation3 + $0x760] sm:$0xff] }
  0x52   :  { %613 = vmatpush.msra.mxu3 %v315_v7  ;;  %546 = vmatpush.msra.mxu0 %v280_v8  ;;  %v317_v7 = vld [vmem:[#allocation3 + $0x7e8] sm:$0xff]  ;;  %v302_v8 = vld [vmem:[#allocation3 + $0x770] sm:$0xff] }
  0x53   :  { %568 = vmatpush.msra.mxu1 %v297_v9  ;;  %592 = vmatpush.msra.mxu2 %v282_v10  ;;  %v319_v9 = vld [vmem:[#allocation3 + $0x7f8] sm:$0xff]  ;;  %v284_v10 = vld [vmem:[#allocation3 + $0x6e0] sm:$0xff] }
  0x54   :  { %614 = vmatpush.msra.mxu3 %v299_v11  ;;  %379 = vmatmul.f32.gmra.mxu0 %v1513_v59  ;;  %v301_v11 = vld [vmem:[#allocation3 + $0x768] sm:$0xff] }
  0x55   :  { %514 = vmatmul.f32.vlgmr.msrb.gmra.mxu2 %v1506_v42  ;;  %547 = vmatpush.msra.mxu0 %v264_v12  ;;  %v286_v12 = vld [vmem:[#allocation3 + $0x6f0] sm:$0xff] }
  0x56   :  { %569 = vmatpush.msra.mxu1 %v281_v13  ;;  %593 = vmatpush.msra.mxu2 %v266_v14  ;;  %v303_v13 = vld [vmem:[#allocation3 + $0x778] sm:$0xff]  ;;  %v268_v14 = vld [vmem:[#allocation3 + $0x660] sm:$0xff] }
  0x57   :  { %615 = vmatpush.msra.mxu3 %v283_v15  ;;  %402 = vmatmul.f32.gmra.mxu1 %v1513_v59  ;;  %v285_v15 = vld [vmem:[#allocation3 + $0x6e8] sm:$0xff] }
  0x58   :  { %537 = vmatmul.f32.vlgmr.msrb.gmra.mxu3 %v1506_v42  ;;  %548 = vmatpush.msra.mxu0 %v248_v16  ;;  %v270_v16 = vld [vmem:[#allocation3 + $0x670] sm:$0xff] }
  0x59   :  { %570 = vmatpush.msra.mxu1 %v265_v17  ;;  %594 = vmatpush.msra.mxu2 %v250_v18  ;;  %v287_v17 = vld [vmem:[#allocation3 + $0x6f8] sm:$0xff]  ;;  %v252_v18 = vld [vmem:[#allocation3 + $0x5e0] sm:$0xff] }
  0x5a   :  { %616 = vmatpush.msra.mxu3 %v267_v19  ;;  %549 = vmatpush.msra.mxu0 %v232_v20  ;;  %v269_v19 = vld [vmem:[#allocation3 + $0x668] sm:$0xff]  ;;  %v254_v20 = vld [vmem:[#allocation3 + $0x5f0] sm:$0xff] }
  0x5b   :  { %571 = vmatpush.msra.mxu1 %v249_v21  ;;  %595 = vmatpush.msra.mxu2 %v234_v22  ;;  %v271_v21 = vld [vmem:[#allocation3 + $0x678] sm:$0xff]  ;;  %v236_v22 = vld [vmem:[#allocation3 + $0x560] sm:$0xff] }
  0x5c   :  { %617 = vmatpush.msra.mxu3 %v251_v23  ;;  %550 = vmatpush.msra.mxu0 %v216_v24  ;;  %v253_v23 = vld [vmem:[#allocation3 + $0x5e8] sm:$0xff]  ;;  %v238_v24 = vld [vmem:[#allocation3 + $0x570] sm:$0xff] }
  0x5d   :  { %572 = vmatpush.msra.mxu1 %v233_v25  ;;  %596 = vmatpush.msra.mxu2 %v218_v26  ;;  %v255_v25 = vld [vmem:[#allocation3 + $0x5f8] sm:$0xff]  ;;  %v220_v26 = vld [vmem:[#allocation3 + $0x4e0] sm:$0xff] }
  0x5e   :  { %618 = vmatpush.msra.mxu3 %v235_v27  ;;  %468 = vmatmul.f32.vlgmr.msrb.gmra.mxu0 %v1506_v42  ;;  %v237_v27 = vld [vmem:[#allocation3 + $0x568] sm:$0xff] }
  0x5f   :  { %573 = vmatpush.msra.mxu1 %v217_v28  ;;  %551 = vmatpush.msra.mxu0 %v200_v29  ;;  %v222_v28 = vld [vmem:[#allocation3 + $0x4f0] sm:$0xff]  ;;  %v239_v29 = vld [vmem:[#allocation3 + $0x578] sm:$0xff] }
  0x60   :  { %597 = vmatpush.msra.mxu2 %v202_v30  ;;  %619 = vmatpush.msra.mxu3 %v219_v31  ;;  %v221_v30 = vld [vmem:[#allocation3 + $0x4e8] sm:$0xff]  ;;  %v204_v31 = vld [vmem:[#allocation3 + $0x460] sm:$0xff] }
  0x61   :  { %491 = vmatmul.f32.vlgmr.msrb.gmra.mxu1 %v1506_v42  ;;  %552 = vmatpush.msra.mxu0 %v184_v32  ;;  %v206_v32 = vld [vmem:[#allocation3 + $0x470] sm:$0xff] }
  0x62   :  { %574 = vmatpush.msra.mxu1 %v201_v33  ;;  %598 = vmatpush.msra.mxu2 %v186_v34  ;;  %v223_v33 = vld [vmem:[#allocation3 + $0x4f8] sm:$0xff]  ;;  %v188_v34 = vld [vmem:[#allocation3 + $0x3e0] sm:$0xff] }
  0x63   :  { %620 = vmatpush.msra.mxu3 %v203_v35  ;;  %553 = vmatpush.msra.mxu0 %v168_v36  ;;  %v205_v35 = vld [vmem:[#allocation3 + $0x468] sm:$0xff]  ;;  %v190_v36 = vld [vmem:[#allocation3 + $0x3f0] sm:$0xff] }
  0x64   :  { %575 = vmatpush.msra.mxu1 %v185_v37  ;;  %599 = vmatpush.msra.mxu2 %v170_v38  ;;  %v207_v37 = vld [vmem:[#allocation3 + $0x478] sm:$0xff]  ;;  %v172_v38 = vld [vmem:[#allocation3 + $0x360] sm:$0xff] }
  0x65   :  { %621 = vmatpush.msra.mxu3 %v187_v39  ;;  %554 = vmatpush.msra.mxu0 %v152_v40  ;;  %v189_v39 = vld [vmem:[#allocation3 + $0x3e8] sm:$0xff]  ;;  %v174_v40 = vld [vmem:[#allocation3 + $0x370] sm:$0xff] }
  0x66   :  { %576 = vmatpush.msra.mxu1 %v169_v41  ;;  %600 = vmatpush.msra.mxu2 %v154_v43  ;;  %v191_v41 = vld [vmem:[#allocation3 + $0x3f8] sm:$0xff]  ;;  %v156_v43 = vld [vmem:[#allocation3 + $0x2e0] sm:$0xff] }
  0x67   :  { %622 = vmatpush.msra.mxu3 %v171_v44  ;;  %555 = vmatpush.msra.mxu0 %v136_v45  ;;  %v173_v44 = vld [vmem:[#allocation3 + $0x368] sm:$0xff]  ;;  %v158_v45 = vld [vmem:[#allocation3 + $0x2f0] sm:$0xff] }
  0x68   :  { %577 = vmatpush.msra.mxu1 %v153_v46  ;;  %601 = vmatpush.msra.mxu2 %v138_v47  ;;  %v175_v46 = vld [vmem:[#allocation3 + $0x378] sm:$0xff]  ;;  %v140_v47 = vld [vmem:[#allocation3 + $0x260] sm:$0xff] }
  0x69   :  { %623 = vmatpush.msra.mxu3 %v155_v48  ;;  %471 = vmatmul.f32.gmra.mxu0 %v1513_v59  ;;  %v157_v48 = vld [vmem:[#allocation3 + $0x2e8] sm:$0xff] }
  0x6a   :  { %517 = vmatmul.f32.gmra.mxu2 %v1513_v59  ;;  %556 = vmatpush.msra.mxu0 %v120_v49  ;;  %v142_v49 = vld [vmem:[#allocation3 + $0x270] sm:$0xff] }
  0x6b   :  { %578 = vmatpush.msra.mxu1 %v137_v50  ;;  %602 = vmatpush.msra.mxu2 %v122_v51  ;;  %v159_v50 = vld [vmem:[#allocation3 + $0x2f8] sm:$0xff]  ;;  %v124_v51 = vld [vmem:[#allocation3 + $0x1e0] sm:$0xff] }
  0x6c   :  { %624 = vmatpush.msra.mxu3 %v139_v52  ;;  %494 = vmatmul.f32.gmra.mxu1 %v1513_v59  ;;  %v141_v52 = vld [vmem:[#allocation3 + $0x268] sm:$0xff] }
  0x6d   :  { %540 = vmatmul.f32.gmra.mxu3 %v1513_v59  ;;  %557 = vmatpush.msra.mxu0 %v104_v53  ;;  %v126_v53 = vld [vmem:[#allocation3 + $0x1f0] sm:$0xff] }
  0x6e   :  { %579 = vmatpush.msra.mxu1 %v121_v54  ;;  %603 = vmatpush.msra.mxu2 %v106_v55  ;;  %v143_v54 = vld [vmem:[#allocation3 + $0x278] sm:$0xff]  ;;  %v108_v55 = vld [vmem:[#allocation3 + $0x160] sm:$0xff] }
  0x6f   :  { %625 = vmatpush.msra.mxu3 %v123_v56  ;;  %558 = vmatpush.msra.mxu0 %v88_v57  ;;  %v125_v56 = vld [vmem:[#allocation3 + $0x1e8] sm:$0xff]  ;;  %v110_v57 = vld [vmem:[#allocation3 + $0x170] sm:$0xff] }
  0x70   :  { %580 = vmatpush.msra.mxu1 %v105_v58  ;;  %604 = vmatpush.msra.mxu2 %v90_v60  ;;  %v127_v58 = vld [vmem:[#allocation3 + $0x1f8] sm:$0xff]  ;;  %v92_v60 = vld [vmem:[#allocation3 + $0xe0] sm:$0xff] }
  0x71   :  { %626 = vmatpush.msra.mxu3 %v107_v61  ;;  %559 = vmatpush.msra.mxu0 %v72_v62  ;;  %v109_v61 = vld [vmem:[#allocation3 + $0x168] sm:$0xff]  ;;  %v94_v62 = vld [vmem:[#allocation3 + $0xf0] sm:$0xff] }
  0x72   :  { %581 = vmatpush.msra.mxu1 %v89_v63  ;;  %605 = vmatpush.msra.mxu2 %v74_v0  ;;  %v111_v63 = vld [vmem:[#allocation3 + $0x178] sm:$0xff]  ;;  %v76_v0 = vld [vmem:[#allocation3 + $0x60] sm:$0xff] }
  0x73   :  { %627 = vmatpush.msra.mxu3 %v91_v1  ;;  %560 = vmatmul.f32.vlgmr.msra.gmra.mxu0 %v1506_v42  ;;  %v93_v1 = vld [vmem:[#allocation3 + $0xe8] sm:$0xff] }
  0x74   :  { %606 = vmatmul.f32.vlgmr.msra.gmra.mxu2 %v1506_v42  ;;  %636 = vmatpush.msrb.mxu0 %v316_v2  ;;  %v78_v2 = vld [vmem:[#allocation3 + $0x70] sm:$0xff] }
  0x75   :  { %682 = vmatpush.msrb.mxu2 %v318_v3  ;;  %582 = vmatpush.msra.mxu1 %v73_v4  ;;  %v95_v3 = vld [vmem:[#allocation3 + $0xf8] sm:$0xff]  ;;  %v77_v4 = vld [vmem:[#allocation3 + $0x68] sm:$0xff] }
  0x76   :  { %628 = vmatpush.msra.mxu3 %v75_v5  ;;  %583 = vmatmul.f32.vlgmr.msra.gmra.mxu1 %v1506_v42  ;;  %v79_v5 = vld [vmem:[#allocation3 + $0x78] sm:$0xff] }
  0x77   :  { %629 = vmatmul.f32.vlgmr.msra.gmra.mxu3 %v1506_v42  ;;  %637 = vmatpush.msrb.mxu0 %v300_v6  ;;  %v777_v6 = vld [vmem:[#allocation5 + $0x78] sm:$0xff] }
  0x78   :  { %659 = vmatpush.msrb.mxu1 %v317_v7  ;;  %683 = vmatpush.msrb.mxu2 %v302_v8  ;;  %v793_v7 = vld [vmem:[#allocation5 + $0xf8] sm:$0xff] }
  0x79   :  { %705 = vmatpush.msrb.mxu3 %v319_v9  ;;  %638 = vmatpush.msrb.mxu0 %v284_v10  ;;  %v809_v8 = vld [vmem:[#allocation5 + $0x178] sm:$0xff]  ;;  %v776_v10 = vld [vmem:[#allocation5 + $0x70] sm:$0xff] }
  0x7a   :  { %660 = vmatpush.msrb.mxu1 %v301_v11  ;;  %684 = vmatpush.msrb.mxu2 %v286_v12  ;;  %v825_v9 = vld [vmem:[#allocation5 + $0x1f8] sm:$0xff]  ;;  %v792_v11 = vld [vmem:[#allocation5 + $0xf0] sm:$0xff] }
  0x7b   :  { %706 = vmatpush.msrb.mxu3 %v303_v13  ;;  %639 = vmatpush.msrb.mxu0 %v268_v14  ;;  %v808_v12 = vld [vmem:[#allocation5 + $0x170] sm:$0xff]  ;;  %v775_v14 = vld [vmem:[#allocation5 + $0x68] sm:$0xff] }
  0x7c   :  { %661 = vmatpush.msrb.mxu1 %v285_v15  ;;  %685 = vmatpush.msrb.mxu2 %v270_v16  ;;  %v824_v13 = vld [vmem:[#allocation5 + $0x1f0] sm:$0xff]  ;;  %v791_v15 = vld [vmem:[#allocation5 + $0xe8] sm:$0xff]  ;;  %v774_v16 = vld [vmem:[#allocation5 + $0x60] sm:$0xff] }
  0x7d   :  { %707 = vmatpush.msrb.mxu3 %v287_v17  ;;  %609 = vmatmul.f32.gmra.mxu2 %v1513_v59  ;;  %v790_v17 = vld [vmem:[#allocation5 + $0xe0] sm:$0xff] }
  0x7e   :  { %640 = vmatpush.msrb.mxu0 %v252_v18  ;;  %662 = vmatpush.msrb.mxu1 %v269_v19  ;;  %v789_v18 = vld [vmem:[#allocation5 + $0xd8] sm:$0xff]  ;;  %v807_v19 = vld [vmem:[#allocation5 + $0x168] sm:$0xff] }
  0x7f   :  { %686 = vmatpush.msrb.mxu2 %v254_v20  ;;  %708 = vmatpush.msrb.mxu3 %v271_v21  ;;  %v823_v20 = vld [vmem:[#allocation5 + $0x1e8] sm:$0xff]  ;;  %v772_v21 = vld [vmem:[#allocation5 + $0x50] sm:$0xff] }
  0x80   :  { %641 = vmatpush.msrb.mxu0 %v236_v22  ;;  %632 = vmatmul.f32.gmra.mxu3 %v1513_v59  ;;  %v788_v22 = vld [vmem:[#allocation5 + $0xd0] sm:$0xff] }
  0x81   :  { %663 = vmatpush.msrb.mxu1 %v253_v23  ;;  %687 = vmatpush.msrb.mxu2 %v238_v24  ;;  %v806_v23 = vld [vmem:[#allocation5 + $0x160] sm:$0xff] }
  0x82   :  { %709 = vmatpush.msrb.mxu3 %v255_v25  ;;  %642 = vmatpush.msrb.mxu0 %v220_v26  ;;  %v822_v24 = vld [vmem:[#allocation5 + $0x1e0] sm:$0xff]  ;;  %v771_v25 = vld [vmem:[#allocation5 + $0x48] sm:$0xff] }
  0x83   :  { %664 = vmatpush.msrb.mxu1 %v237_v27  ;;  %688 = vmatpush.msrb.mxu2 %v222_v28  ;;  %v787_v26 = vld [vmem:[#allocation5 + $0xc8] sm:$0xff]  ;;  %v805_v27 = vld [vmem:[#allocation5 + $0x158] sm:$0xff] }
  0x84   :  { %710 = vmatpush.msrb.mxu3 %v239_v29  ;;  %563 = vmatmul.f32.gmra.mxu0 %v1513_v59  ;;  %v821_v28 = vld [vmem:[#allocation5 + $0x1d8] sm:$0xff]  ;;  %v770_v29 = vld [vmem:[#allocation5 + $0x40] sm:$0xff] }
  0x85   :  { %665 = vmatpush.msrb.mxu1 %v221_v30  ;;  %643 = vmatpush.msrb.mxu0 %v204_v31  ;;  %v786_v30 = vld [vmem:[#allocation5 + $0xc0] sm:$0xff]  ;;  %v820_v31 = vld [vmem:[#allocation5 + $0x1d0] sm:$0xff] }
  0x86   :  { %689 = vmatpush.msrb.mxu2 %v206_v32  ;;  %711 = vmatpush.msrb.mxu3 %v223_v33  ;;  %v769_v32 = vld [vmem:[#allocation5 + $0x38] sm:$0xff] }
  0x87   :  { %586 = vmatmul.f32.gmra.mxu1 %v1513_v59  ;;  %644 = vmatpush.msrb.mxu0 %v188_v34  ;;  %v785_v33 = vld [vmem:[#allocation5 + $0xb8] sm:$0xff]  ;;  %v803_v34 = vld [vmem:[#allocation5 + $0x148] sm:$0xff] }
  0x88   :  { %666 = vmatpush.msrb.mxu1 %v205_v35  ;;  %690 = vmatpush.msrb.mxu2 %v190_v36  ;;  %v819_v35 = vld [vmem:[#allocation5 + $0x1c8] sm:$0xff]  ;;  %v768_v36 = vld [vmem:[#allocation5 + $0x30] sm:$0xff] }
  0x89   :  { %712 = vmatpush.msrb.mxu3 %v207_v37  ;;  %645 = vmatpush.msrb.mxu0 %v172_v38  ;;  %v784_v37 = vld [vmem:[#allocation5 + $0xb0] sm:$0xff]  ;;  %v802_v38 = vld [vmem:[#allocation5 + $0x140] sm:$0xff] }
  0x8a   :  { %667 = vmatpush.msrb.mxu1 %v189_v39  ;;  %691 = vmatpush.msrb.mxu2 %v174_v40  ;;  %v818_v39 = vld [vmem:[#allocation5 + $0x1c0] sm:$0xff]  ;;  %v767_v40 = vld [vmem:[#allocation5 + $0x28] sm:$0xff] }
  0x8b   :  { %713 = vmatpush.msrb.mxu3 %v191_v41  ;;  %646 = vmatpush.msrb.mxu0 %v156_v43  ;;  %v783_v41 = vld [vmem:[#allocation5 + $0xa8] sm:$0xff]  ;;  %v801_v43 = vld [vmem:[#allocation5 + $0x138] sm:$0xff] }
  0x8c   :  { %668 = vmatpush.msrb.mxu1 %v173_v44  ;;  %692 = vmatpush.msrb.mxu2 %v158_v45  ;;  %v817_v44 = vld [vmem:[#allocation5 + $0x1b8] sm:$0xff]  ;;  %v766_v45 = vld [vmem:[#allocation5 + $0x20] sm:$0xff] }
  0x8d   :  { %714 = vmatpush.msrb.mxu3 %v175_v46  ;;  %647 = vmatpush.msrb.mxu0 %v140_v47  ;;  %v782_v46 = vld [vmem:[#allocation5 + $0xa0] sm:$0xff]  ;;  %v800_v47 = vld [vmem:[#allocation5 + $0x130] sm:$0xff] }
  0x8e   :  { %669 = vmatpush.msrb.mxu1 %v157_v48  ;;  %693 = vmatpush.msrb.mxu2 %v142_v49  ;;  %v816_v48 = vld [vmem:[#allocation5 + $0x1b0] sm:$0xff]  ;;  %v765_v49 = vld [vmem:[#allocation5 + $0x18] sm:$0xff] }
  0x8f   :  { %715 = vmatpush.msrb.mxu3 %v159_v50  ;;  %648 = vmatpush.msrb.mxu0 %v124_v51  ;;  %v781_v50 = vld [vmem:[#allocation5 + $0x98] sm:$0xff]  ;;  %v799_v51 = vld [vmem:[#allocation5 + $0x128] sm:$0xff] }
  0x90   :  { %670 = vmatpush.msrb.mxu1 %v141_v52  ;;  %694 = vmatpush.msrb.mxu2 %v126_v53  ;;  %v815_v52 = vld [vmem:[#allocation5 + $0x1a8] sm:$0xff]  ;;  %v764_v53 = vld [vmem:[#allocation5 + $0x10] sm:$0xff] }
  0x91   :  { %716 = vmatpush.msrb.mxu3 %v143_v54  ;;  %649 = vmatpush.msrb.mxu0 %v108_v55  ;;  %v780_v54 = vld [vmem:[#allocation5 + $0x90] sm:$0xff]  ;;  %v798_v55 = vld [vmem:[#allocation5 + $0x120] sm:$0xff] }
  0x92   :  { %671 = vmatpush.msrb.mxu1 %v125_v56  ;;  %695 = vmatpush.msrb.mxu2 %v110_v57  ;;  %v814_v56 = vld [vmem:[#allocation5 + $0x1a0] sm:$0xff]  ;;  %v763_v57 = vld [vmem:[#allocation5 + $0x8] sm:$0xff] }
  0x93   :  { %717 = vmatpush.msrb.mxu3 %v127_v58  ;;  %650 = vmatpush.msrb.mxu0 %v92_v60  ;;  %v779_v58 = vld [vmem:[#allocation5 + $0x88] sm:$0xff]  ;;  %v797_v60 = vld [vmem:[#allocation5 + $0x118] sm:$0xff] }
  0x94   :  { %672 = vmatpush.msrb.mxu1 %v109_v61  ;;  %696 = vmatpush.msrb.mxu2 %v94_v62  ;;  %v813_v61 = vld [vmem:[#allocation5 + $0x198] sm:$0xff]  ;;  %v762_v62 = vld [vmem:[#allocation5] sm:$0xff] }
  0x95   :  { %718 = vmatpush.msrb.mxu3 %v111_v63  ;;  %651 = vmatpush.msrb.mxu0 %v76_v0  ;;  %v778_v63 = vld [vmem:[#allocation5 + $0x80] sm:$0xff]  ;;  %v841_v0 = vld [vmem:[#allocation5 + $0x278] sm:$0xff] }
  0x96   :  { %673 = vmatpush.msrb.mxu1 %v93_v1  ;;  %697 = vmatpush.msrb.mxu2 %v78_v2  ;;  %v796_v1 = vld [vmem:[#allocation5 + $0x110] sm:$0xff]  ;;  %v857_v2 = vld [vmem:[#allocation5 + $0x2f8] sm:$0xff] }
  0x97   :  { %719 = vmatpush.msrb.mxu3 %v95_v3  ;;  %652 = vmatmul.f32.vlgmr.msrb.gmra.mxu0 %v1506_v42  ;;  %v812_v3 = vld [vmem:[#allocation5 + $0x190] sm:$0xff] }
  0x98   :  { %698 = vmatmul.f32.vlgmr.msrb.gmra.mxu2 %v1506_v42  ;;  %674 = vmatpush.msrb.mxu1 %v77_v4  ;;  %v840_v4 = vld [vmem:[#allocation5 + $0x270] sm:$0xff] }
  0x99   :  { %720 = vmatpush.msrb.mxu3 %v79_v5  ;;  %675 = vmatmul.f32.vlgmr.msrb.gmra.mxu1 %v1506_v42  ;;  %v795_v5 = vld [vmem:[#allocation5 + $0x108] sm:$0xff] }
  0x9a   :  { %721 = vmatmul.f32.vlgmr.msrb.gmra.mxu3 %v1506_v42  ;;  %1018 = vmatpush.msra.mxu0 %v777_v6  ;;  %v773_v42 = vld [vmem:[#allocation5 + $0x58] sm:$0xff]  ;;  %v856_v6 = vld [vmem:[#allocation5 + $0x2f0] sm:$0xff] }
  0x9b   :  { %1041 = vmatpush.msra.mxu1 %v793_v7  ;;  %1064 = vmatpush.msra.mxu2 %v809_v8  ;;  %v811_v7 = vld [vmem:[#allocation5 + $0x188] sm:$0xff] }
  0x9c   :  { %1087 = vmatpush.msra.mxu3 %v825_v9  ;;  %1019 = vmatpush.msra.mxu0 %v776_v10  ;;  %v839_v8 = vld [vmem:[#allocation5 + $0x268] sm:$0xff]  ;;  %v794_v9 = vld [vmem:[#allocation5 + $0x100] sm:$0xff] }
  0x9d   :  { %1042 = vmatpush.msra.mxu1 %v792_v11  ;;  %1065 = vmatpush.msra.mxu2 %v808_v12  ;;  %v855_v10 = vld [vmem:[#allocation5 + $0x2e8] sm:$0xff]  ;;  %v873_v11 = vld [vmem:[#allocation5 + $0x378] sm:$0xff]  ;;  %v838_v12 = vld [vmem:[#allocation5 + $0x260] sm:$0xff] }
  0x9e   :  { %1088 = vmatpush.msra.mxu3 %v824_v13  ;;  %1020 = vmatpush.msra.mxu0 %v775_v14  ;;  %v810_v13 = vld [vmem:[#allocation5 + $0x180] sm:$0xff] }
  0x9f   :  { %1043 = vmatpush.msra.mxu1 %v791_v15  ;;  %655 = vmatmul.f32.gmra.mxu0 %v1513_v59  ;;  %v854_v14 = vld [vmem:[#allocation5 + $0x2e0] sm:$0xff]  ;;  %v872_v15 = vld [vmem:[#allocation5 + $0x370] sm:$0xff] }
  0xa0   :  { %701 = vmatmul.f32.gmra.mxu2 %v1513_v59  ;;  %1021 = vmatpush.msra.mxu0 %v774_v16  ;;  %v837_v16 = vld [vmem:[#allocation5 + $0x258] sm:$0xff] }
  0xa1   :  { %1044 = vmatpush.msra.mxu1 %v790_v17  ;;  %1066 = vmatpush.msra.mxu2 %v807_v19  ;;  %v889_v17 = vld [vmem:[#allocation5 + $0x3f8] sm:$0xff]  ;;  %v836_v19 = vld [vmem:[#allocation5 + $0x250] sm:$0xff] }
  0xa2   :  { %678 = vmatmul.f32.gmra.mxu1 %v1513_v59  ;;  %724 = vmatmul.f32.gmra.mxu3 %v1513_v59  ;;  %v804_v59 = vld [vmem:[#allocation5 + $0x150] sm:$0xff] }
  0xa3   :  { %1022 = vmatpush.msra.mxu0 %v773_v42  ;;  %1045 = vmatpush.msra.mxu1 %v789_v18  ;;  %v853_v42 = vld [vmem:[#allocation5 + $0x2d8] sm:$0xff]  ;;  %v871_v18 = vld [vmem:[#allocation5 + $0x368] sm:$0xff] }
  0xa4   :  { %1089 = vmatpush.msra.mxu3 %v823_v20  ;;  %1067 = vmatpush.msra.mxu2 %v806_v23  ;;  %v888_v20 = vld [vmem:[#allocation5 + $0x3f0] sm:$0xff]  ;;  %v835_v23 = vld [vmem:[#allocation5 + $0x248] sm:$0xff] }
  0xa5   :  { %1023 = vmatpush.msra.mxu0 %v772_v21  ;;  %1046 = vmatpush.msra.mxu1 %v788_v22  ;;  %v852_v21 = vld [vmem:[#allocation5 + $0x2d0] sm:$0xff]  ;;  %v870_v22 = vld [vmem:[#allocation5 + $0x360] sm:$0xff] }
  0xa6   :  { %1090 = vmatpush.msra.mxu3 %v822_v24  ;;  %1068 = vmatpush.msra.mxu2 %v805_v27  ;;  %v887_v24 = vld [vmem:[#allocation5 + $0x3e8] sm:$0xff]  ;;  %v834_v27 = vld [vmem:[#allocation5 + $0x240] sm:$0xff] }
  0xa7   :  { %1024 = vmatpush.msra.mxu0 %v771_v25  ;;  %1047 = vmatpush.msra.mxu1 %v787_v26  ;;  %v851_v25 = vld [vmem:[#allocation5 + $0x2c8] sm:$0xff]  ;;  %v869_v26 = vld [vmem:[#allocation5 + $0x358] sm:$0xff] }
  0xa8   :  { %1091 = vmatpush.msra.mxu3 %v821_v28  ;;  %1069 = vmatpush.msra.mxu2 %v804_v59  ;;  %v886_v28 = vld [vmem:[#allocation5 + $0x3e0] sm:$0xff] }
  0xa9   :  { %1025 = vmatpush.msra.mxu0 %v770_v29  ;;  %1048 = vmatpush.msra.mxu1 %v786_v30  ;;  %v850_v29 = vld [vmem:[#allocation5 + $0x2c0] sm:$0xff]  ;;  %v868_v30 = vld [vmem:[#allocation5 + $0x350] sm:$0xff] }
  0xaa   :  { %1092 = vmatpush.msra.mxu3 %v820_v31  ;;  %1070 = vmatpush.msra.mxu2 %v803_v34  ;;  %v1548_v59 = vld [vmem:[%s1622_s2] sm:$0xff]  ;;  %v833_v31 = vld [vmem:[#allocation5 + $0x238] sm:$0xff]  ;;  %v867_v34 = vld [vmem:[#allocation5 + $0x348] sm:$0xff] }
  0xab   :  { %1026 = vmatpush.msra.mxu0 %v769_v32  ;;  %1049 = vmatpush.msra.mxu1 %v785_v33  ;;  %v885_v32 = vld [vmem:[#allocation5 + $0x3d8] sm:$0xff] }
  0xac   :  { %1093 = vmatpush.msra.mxu3 %v819_v35  ;;  %1071 = vmatpush.msra.mxu2 %v802_v38  ;;  %v849_v33 = vld [vmem:[#allocation5 + $0x2b8] sm:$0xff]  ;;  %v832_v35 = vld [vmem:[#allocation5 + $0x230] sm:$0xff] }
  0xad   :  { %1027 = vmatpush.msra.mxu0 %v768_v36  ;;  %1050 = vmatpush.msra.mxu1 %v784_v37  ;;  %v884_v36 = vld [vmem:[#allocation5 + $0x3d0] sm:$0xff]  ;;  %v330_v37 = vperm.slane %v1548_v59, 2 }
  0xae   :  { %1094 = vmatpush.msra.mxu3 %v818_v39  ;;  %1072 = vmatpush.msra.mxu2 %v801_v43  ;;  %v848_v38 = vld [vmem:[#allocation5 + $0x2b0] sm:$0xff]  ;;  %v866_v39 = vld [vmem:[#allocation5 + $0x340] sm:$0xff]  ;;  %v883_v43 = vld [vmem:[#allocation5 + $0x3c8] sm:$0xff] }
  0xaf   :  { %1028 = vmatpush.msra.mxu0 %v767_v40  ;;  %1051 = vmatpush.msra.mxu1 %v783_v41  ;;  %v831_v41 = vld [vmem:[#allocation5 + $0x228] sm:$0xff] }
  0xb0   :  { %1095 = vmatpush.msra.mxu3 %v817_v44  ;;  %1073 = vmatpush.msra.mxu2 %v800_v47  ;;  %v328_v44 = vperm.slane %v1548_v59, 0 }
  0xb1   :  { %1029 = vmatpush.msra.mxu0 %v766_v45  ;;  %1052 = vmatpush.msra.mxu1 %v782_v46  ;;  %v847_v45 = vld [vmem:[#allocation5 + $0x2a8] sm:$0xff]  ;;  %v865_v46 = vld [vmem:[#allocation5 + $0x338] sm:$0xff] }
  0xb2   :  { %1096 = vmatpush.msra.mxu3 %v816_v48  ;;  %1074 = vmatpush.msra.mxu2 %v799_v51  ;;  %v331_v48 = vperm.slane %v1548_v59, 3  ;;  %v882_v51 = vld [vmem:[#allocation5 + $0x3c0] sm:$0xff] }
  0xb3   :  { %1030 = vmatpush.msra.mxu0 %v765_v49  ;;  %1053 = vmatpush.msra.mxu1 %v781_v50  ;;  %v830_v50 = vld [vmem:[#allocation5 + $0x220] sm:$0xff] }
  0xb4   :  { %1097 = vmatpush.msra.mxu3 %v815_v52  ;;  %1075 = vmatpush.msra.mxu2 %v798_v55  ;;  %v329_v55 = vperm.slane %v1548_v59, 1 }
  0xb5   :  { %1031 = vmatpush.msra.mxu0 %v764_v53  ;;  %1054 = vmatpush.msra.mxu1 %v780_v54  ;;  %v846_v53 = vld [vmem:[#allocation5 + $0x2a0] sm:$0xff]  ;;  %v864_v54 = vld [vmem:[#allocation5 + $0x330] sm:$0xff] }
  0xb6   :  { %1098 = vmatpush.msra.mxu3 %v814_v56  ;;  %1076 = vmatpush.msra.mxu2 %v797_v60 }
  0xb7   :  { %1032 = vmatpush.msra.mxu0 %v763_v57  ;;  %1055 = vmatpush.msra.mxu1 %v779_v58  ;;  %v829_v57 = vld [vmem:[#allocation5 + $0x218] sm:$0xff] }
  0xb8   :  { %1099 = vmatpush.msra.mxu3 %v813_v61  ;;  %1077 = vmatpush.msra.mxu2 %v796_v1  ;;  %v881_v58 = vld [vmem:[#allocation5 + $0x3b8] sm:$0xff]  ;;  %v828_v1 = vld [vmem:[#allocation5 + $0x210] sm:$0xff] }
  0xb9   :  { %1033 = vmatpush.msra.mxu0 %v762_v62  ;;  %1056 = vmatpush.msra.mxu1 %v778_v63  ;;  %v845_v62 = vld [vmem:[#allocation5 + $0x298] sm:$0xff]  ;;  %v863_v63 = vld [vmem:[#allocation5 + $0x328] sm:$0xff] }
  0xba   :  { %1100 = vmatpush.msra.mxu3 %v812_v3  ;;  %1078 = vmatpush.msra.mxu2 %v795_v5 }
  0xbb   :  { %1110 = vmatpush.msrb.mxu0 %v841_v0  ;;  %1133 = vmatpush.msrb.mxu1 %v857_v2  ;;  %v880_v2 = vld [vmem:[#allocation5 + $0x3b0] sm:$0xff] }
  0xbc   :  { %1101 = vmatpush.msra.mxu3 %v811_v7  ;;  %1079 = vmatpush.msra.mxu2 %v794_v9  ;;  %v862_v7 = vld [vmem:[#allocation5 + $0x320] sm:$0xff]  ;;  %v879_v9 = vld [vmem:[#allocation5 + $0x3a8] sm:$0xff] }
  0xbd   :  { %1111 = vmatpush.msrb.mxu0 %v840_v4  ;;  %1134 = vmatpush.msrb.mxu1 %v856_v6  ;;  %v844_v4 = vld [vmem:[#allocation5 + $0x290] sm:$0xff]  ;;  %v827_v6 = vld [vmem:[#allocation5 + $0x208] sm:$0xff] }
  0xbe   :  { %1156 = vmatpush.msrb.mxu2 %v873_v11  ;;  %1102 = vmatpush.msra.mxu3 %v810_v13  ;;  %v826_v11 = vld [vmem:[#allocation5 + $0x200] sm:$0xff]  ;;  %v843_v13 = vld [vmem:[#allocation5 + $0x288] sm:$0xff] }
  0xbf   :  { %1112 = vmatpush.msrb.mxu0 %v839_v8  ;;  %1135 = vmatpush.msrb.mxu1 %v855_v10 }
  0xc0   :  { %1157 = vmatpush.msrb.mxu2 %v872_v15  ;;  %1179 = vmatpush.msrb.mxu3 %v889_v17  ;;  %v878_v17 = vld [vmem:[#allocation5 + $0x3a0] sm:$0xff] }
  0xc1   :  { %1113 = vmatpush.msrb.mxu0 %v838_v12  ;;  %1136 = vmatpush.msrb.mxu1 %v854_v14  ;;  %v861_v14 = vld [vmem:[#allocation5 + $0x318] sm:$0xff] }
  0xc2   :  { %1158 = vmatpush.msrb.mxu2 %v871_v18  ;;  %1180 = vmatpush.msrb.mxu3 %v888_v20  ;;  %v905_v18 = vld [vmem:[#allocation5 + $0x478] sm:$0xff] }
  0xc3   :  { %1114 = vmatpush.msrb.mxu0 %v837_v16  ;;  %1137 = vmatpush.msrb.mxu1 %v853_v42 }
  0xc4   :  { %1159 = vmatpush.msrb.mxu2 %v870_v22  ;;  %1181 = vmatpush.msrb.mxu3 %v887_v24  ;;  %v877_v22 = vld [vmem:[#allocation5 + $0x398] sm:$0xff] }
  0xc5   :  { %1115 = vmatpush.msrb.mxu0 %v836_v19  ;;  %1138 = vmatpush.msrb.mxu1 %v852_v21  ;;  %v423_v40 = vpop.f32.mrf.mxu2  ;;  %v842_v19 = vld [vmem:[#allocation5 + $0x280] sm:$0xff]  ;;  %v860_v21 = vld [vmem:[#allocation5 + $0x310] sm:$0xff] }
  0xc6   :  { %1160 = vmatpush.msrb.mxu2 %v869_v26  ;;  %1182 = vmatpush.msrb.mxu3 %v886_v28  ;;  %v424_v49 = vadd.f32 %v423_v40, %v330_v37  ;;  %v921_v26 = vld [vmem:[#allocation5 + $0x4f8] sm:$0xff]  ;;  %v859_v28 = vld [vmem:[#allocation5 + $0x308] sm:$0xff]  ;;  %v332_v40 = vperm.slane %v1548_v59, 4 }
  0xc7   :  { %1116 = vmatpush.msrb.mxu0 %v835_v23  ;;  %1139 = vmatpush.msrb.mxu1 %v851_v25  ;;  %v377_v47 = vpop.f32.mrf.mxu0  ;;  %v446_v52 = vpop.f32.mrf.mxu3  ;;  %v904_v25 = vld [vmem:[#allocation5 + $0x470] sm:$0xff] }
  0xc8   :  { %1161 = vmatpush.msrb.mxu2 %v868_v30  ;;  %1183 = vmatpush.msrb.mxu3 %v885_v32  ;;  %v378_v56 = vadd.f32 %v377_v47, %v328_v44  ;;  %v447_v61 = vadd.f32 %v446_v52, %v331_v48  ;;  %v730_v0 = vmax.f32 %v424_v49, 0.0  ;;  %v333_v52 = vperm.slane %v1548_v59, 5 }
  0xc9   :  { %1117 = vmatpush.msrb.mxu0 %v834_v27  ;;  %1140 = vmatpush.msrb.mxu1 %v850_v29  ;;  %v876_v29 = vld [vmem:[#allocation5 + $0x390] sm:$0xff] }
  0xca   :  { %1162 = vmatpush.msrb.mxu2 %v867_v34  ;;  %1184 = vmatpush.msrb.mxu3 %v884_v36  ;;  %v400_v60 = vpop.f32.mrf.mxu1  ;;  %v728_v5 = vmax.f32 %v378_v56, 0.0  ;;  %v731_v8 = vmax.f32 %v447_v61, 0.0  ;;  %v858_v34 = vld [vmem:[#allocation5 + $0x300] sm:$0xff] }
  0xcb   :  { %1118 = vmatpush.msrb.mxu0 %v833_v31  ;;  %1141 = vmatpush.msrb.mxu1 %v849_v33  ;;  %v401_v3 = vadd.f32 %v400_v60, %v329_v55  ;;  %v903_v31 = vld [vmem:[#allocation5 + $0x468] sm:$0xff]  ;;  %v920_v33 = vld [vmem:[#allocation5 + $0x4f0] sm:$0xff]  ;;  %v917_v60 = vld [vmem:[#allocation5 + $0x4d8] sm:$0xff] }
  0xcc   :  { %1163 = vmatpush.msrb.mxu2 %v866_v39  ;;  %1185 = vmatpush.msrb.mxu3 %v883_v43  ;;  %v902_v39 = vld [vmem:[#allocation5 + $0x460] sm:$0xff]  ;;  %v919_v43 = vld [vmem:[#allocation5 + $0x4e8] sm:$0xff] }
  0xcd   :  { %1119 = vmatpush.msrb.mxu0 %v832_v35  ;;  %1142 = vmatpush.msrb.mxu1 %v848_v38  ;;  %v729_v12 = vmax.f32 %v401_v3, 0.0  ;;  %v334_v35 = vperm.slane %v1548_v59, 6  ;;  %v916_v3 = vld [vmem:[#allocation5 + $0x4d0] sm:$0xff] }
  0xce   :  { %1164 = vmatpush.msrb.mxu2 %v865_v46  ;;  %1186 = vmatpush.msrb.mxu3 %v882_v51  ;;  %v426_v10 = vpop.f32.mrf.mxu2  ;;  %v335_v46 = vperm.slane %v1548_v59, 7  ;;  %v918_v51 = vld [vmem:[#allocation5 + $0x4e0] sm:$0xff] }
  0xcf   :  { %1120 = vmatpush.msrb.mxu0 %v831_v41  ;;  %1143 = vmatpush.msrb.mxu1 %v847_v45  ;;  %v427_v16 = vadd.f32 %v426_v10, %v330_v37  ;;  %v875_v37 = vld [vmem:[#allocation5 + $0x388] sm:$0xff]  ;;  %v933_v10 = vld [vmem:[#allocation5 + $0x558] sm:$0xff] }
  0xd0   :  { %1165 = vmatpush.msrb.mxu2 %v864_v54  ;;  %1187 = vmatpush.msrb.mxu3 %v881_v58  ;;  %v953_v54 = vld [vmem:[#allocation5 + $0x5f8] sm:$0xff]  ;;  %v900_v58 = vld [vmem:[#allocation5 + $0x450] sm:$0xff] }
  0xd1   :  { %1121 = vmatpush.msrb.mxu0 %v830_v50  ;;  %1144 = vmatpush.msrb.mxu1 %v846_v53  ;;  %v380_v15 = vpop.f32.mrf.mxu0  ;;  %v449_v42 = vpop.f32.mrf.mxu3  ;;  %v746_v27 = vmax.f32 %v427_v16, 0.0  ;;  %v901_v50 = vld [vmem:[#allocation5 + $0x458] sm:$0xff]  ;;  %v936_v53 = vld [vmem:[#allocation5 + $0x570] sm:$0xff] }
  0xd2   :  { %1166 = vmatpush.msrb.mxu2 %v863_v63  ;;  %1188 = vmatpush.msrb.mxu3 %v880_v2  ;;  %v381_v20 = vadd.f32 %v380_v15, %v328_v44  ;;  %v450_v24 = vadd.f32 %v449_v42, %v331_v48  ;;  %v937_v44 = vld [vmem:[#allocation5 + $0x578] sm:$0xff]  ;;  %v874_v48 = vld [vmem:[#allocation5 + $0x380] sm:$0xff]  ;;  %v952_v63 = vld [vmem:[#allocation5 + $0x5f0] sm:$0xff] }
  0xd3   :  { %1122 = vmatpush.msrb.mxu0 %v829_v57  ;;  %1145 = vmatpush.msrb.mxu1 %v845_v62  ;;  %v935_v62 = vld [vmem:[#allocation5 + $0x568] sm:$0xff]  ;;  %v932_v15 = vld [vmem:[#allocation5 + $0x550] sm:$0xff]  ;;  %v949_v16 = vld [vmem:[#allocation5 + $0x5d8] sm:$0xff] }
  0xd4   :  { %1080 = vmatmul.f32.vlgmr.msra.gmra.mxu2 %v730_v0  ;;  %1189 = vmatpush.msrb.mxu3 %v879_v9  ;;  %v403_v23 = vpop.f32.mrf.mxu1  ;;  %v744_v32 = vmax.f32 %v381_v20, 0.0  ;;  %v747_v36 = vmax.f32 %v450_v24, 0.0  ;;  %v915_v9 = vld [vmem:[#allocation5 + $0x4c8] sm:$0xff]  ;;  %v913_v42 = vld [vmem:[#allocation5 + $0x4b8] sm:$0xff] }
  0xd5   :  { %1123 = vmatpush.msrb.mxu0 %v828_v1  ;;  %1146 = vmatpush.msrb.mxu1 %v844_v4  ;;  %v404_v30 = vadd.f32 %v403_v23, %v329_v55  ;;  %v899_v1 = vld [vmem:[#allocation5 + $0x448] sm:$0xff]  ;;  %v934_v4 = vld [vmem:[#allocation5 + $0x560] sm:$0xff]  ;;  %v912_v23 = vld [vmem:[#allocation5 + $0x4b0] sm:$0xff] }
  0xd6   :  { %1167 = vmatpush.msrb.mxu2 %v862_v7  ;;  %1034 = vmatmul.f32.vlgmr.msra.gmra.mxu0 %v728_v5  ;;  %v898_v7 = vld [vmem:[#allocation5 + $0x440] sm:$0xff]  ;;  %v931_v20 = vld [vmem:[#allocation5 + $0x548] sm:$0xff] }
  0xd7   :  { %1124 = vmatpush.msrb.mxu0 %v827_v6  ;;  %1103 = vmatmul.f32.vlgmr.msra.gmra.mxu3 %v731_v8  ;;  %v745_v41 = vmax.f32 %v404_v30, 0.0  ;;  %v951_v6 = vld [vmem:[#allocation5 + $0x5e8] sm:$0xff] }
  0xd8   :  { %1147 = vmatpush.msrb.mxu1 %v843_v13  ;;  %1168 = vmatpush.msrb.mxu2 %v861_v14  ;;  %v515_v38 = vpop.f32.mrf.mxu2  ;;  %v897_v13 = vld [vmem:[#allocation5 + $0x438] sm:$0xff]  ;;  %v914_v14 = vld [vmem:[#allocation5 + $0x4c0] sm:$0xff] }
  0xd9   :  { %1125 = vmatpush.msrb.mxu0 %v826_v11  ;;  %1190 = vmatpush.msrb.mxu3 %v878_v17  ;;  %v516_v47 = vadd.f32 %v515_v38, %v334_v35  ;;  %v950_v11 = vld [vmem:[#allocation5 + $0x5e0] sm:$0xff]  ;;  %v896_v17 = vld [vmem:[#allocation5 + $0x430] sm:$0xff]  ;;  %v893_v38 = vld [vmem:[#allocation5 + $0x418] sm:$0xff] }
  0xda   :  { %1057 = vmatmul.f32.vlgmr.msra.gmra.mxu1 %v729_v12  ;;  %1169 = vmatpush.msrb.mxu2 %v860_v21  ;;  %v948_v21 = vld [vmem:[#allocation5 + $0x5d0] sm:$0xff] }
  0xdb   :  { %1202 = vmatpush.msra.mxu0 %v905_v18  ;;  %1148 = vmatpush.msrb.mxu1 %v842_v19  ;;  %v469_v45 = vpop.f32.mrf.mxu0  ;;  %v538_v49 = vpop.f32.mrf.mxu3  ;;  %v734_v61 = vmax.f32 %v516_v47, 0.0  ;;  %v909_v47 = vld [vmem:[#allocation5 + $0x498] sm:$0xff] }
  0xdc   :  { %1191 = vmatpush.msrb.mxu3 %v877_v22  ;;  %1170 = vmatpush.msrb.mxu2 %v859_v28  ;;  %v470_v55 = vadd.f32 %v469_v45, %v332_v40  ;;  %v539_v57 = vadd.f32 %v538_v49, %v335_v46  ;;  %v895_v22 = vld [vmem:[#allocation5 + $0x428] sm:$0xff]  ;;  %v894_v28 = vld [vmem:[#allocation5 + $0x420] sm:$0xff]  ;;  %v892_v45 = vld [vmem:[#allocation5 + $0x410] sm:$0xff] }
  0xdd   :  { %1203 = vmatpush.msra.mxu0 %v904_v25  ;;  %1225 = vmatpush.msra.mxu1 %v921_v26  ;;  %v930_v25 = vld [vmem:[#allocation5 + $0x540] sm:$0xff]  ;;  %v947_v26 = vld [vmem:[#allocation5 + $0x5c8] sm:$0xff] }
  0xde   :  { %1192 = vmatpush.msrb.mxu3 %v876_v29  ;;  %1083 = vmatmul.f32.gmra.mxu2 %v746_v27  ;;  %v492_v56 = vpop.f32.mrf.mxu1  ;;  %v732_v2 = vmax.f32 %v470_v55, 0.0  ;;  %v735_v5 = vmax.f32 %v539_v57, 0.0  ;;  %v1589_v27 = vld [vmem:[%s1622_s2 + $0x8] sm:$0xff] }
  0xdf   :  { %1204 = vmatpush.msra.mxu0 %v903_v31  ;;  %1226 = vmatpush.msra.mxu1 %v920_v33  ;;  %v493_v0 = vadd.f32 %v492_v56, %v333_v52  ;;  %v911_v29 = vld [vmem:[#allocation5 + $0x4a8] sm:$0xff]  ;;  %v946_v33 = vld [vmem:[#allocation5 + $0x5c0] sm:$0xff]  ;;  %v338_v59 = vperm.slane %v1589_v27, 2 }
  0xe0   :  { %1171 = vmatpush.msrb.mxu2 %v858_v34  ;;  %1193 = vmatpush.msrb.mxu3 %v875_v37  ;;  %v910_v34 = vld [vmem:[#allocation5 + $0x4a0] sm:$0xff]  ;;  %v943_v57 = vld [vmem:[#allocation5 + $0x5a8] sm:$0xff] }
  0xe1   :  { %1037 = vmatmul.f32.gmra.mxu0 %v744_v32  ;;  %1106 = vmatmul.f32.gmra.mxu3 %v747_v36  ;;  %v733_v8 = vmax.f32 %v493_v0, 0.0  ;;  %v929_v32 = vld [vmem:[#allocation5 + $0x538] sm:$0xff]  ;;  %v336_v36 = vperm.slane %v1589_v27, 0  ;;  %v926_v56 = vld [vmem:[#allocation5 + $0x520] sm:$0xff] }
  0xe2   :  { %1205 = vmatpush.msra.mxu0 %v902_v39  ;;  %1227 = vmatpush.msra.mxu1 %v919_v43  ;;  %v928_v39 = vld [vmem:[#allocation5 + $0x530] sm:$0xff] }
  0xe3   :  { %1248 = vmatpush.msra.mxu2 %v937_v44  ;;  %1194 = vmatpush.msrb.mxu3 %v874_v48  ;;  %v945_v44 = vld [vmem:[#allocation5 + $0x5b8] sm:$0xff]  ;;  %v337_v48 = vperm.slane %v1589_v27, 1 }
  0xe4   :  { %1060 = vmatmul.f32.gmra.mxu1 %v745_v41  ;;  %1206 = vmatpush.msra.mxu0 %v901_v50  ;;  %v927_v50 = vld [vmem:[#allocation5 + $0x528] sm:$0xff] }
  0xe5   :  { %1228 = vmatpush.msra.mxu1 %v918_v51  ;;  %1249 = vmatpush.msra.mxu2 %v936_v53  ;;  %v944_v51 = vld [vmem:[#allocation5 + $0x5b0] sm:$0xff]  ;;  %v891_v53 = vld [vmem:[#allocation5 + $0x408] sm:$0xff] }
  0xe6   :  { %1271 = vmatpush.msra.mxu3 %v953_v54  ;;  %1207 = vmatpush.msra.mxu0 %v900_v58  ;;  %v472_v12 = vpop.f32.mrf.mxu0  ;;  %v908_v54 = vld [vmem:[#allocation5 + $0x490] sm:$0xff] }
  0xe7   :  { %1229 = vmatpush.msra.mxu1 %v917_v60  ;;  %1250 = vmatpush.msra.mxu2 %v935_v62  ;;  %v473_v19 = vadd.f32 %v472_v12, %v332_v40  ;;  %v890_v60 = vld [vmem:[#allocation5 + $0x400] sm:$0xff]  ;;  %v907_v62 = vld [vmem:[#allocation5 + $0x488] sm:$0xff] }
  0xe8   :  { %1272 = vmatpush.msra.mxu3 %v952_v63  ;;  %1172 = vmatmul.f32.vlgmr.msrb.gmra.mxu2 %v734_v61  ;;  %v925_v63 = vld [vmem:[#allocation5 + $0x518] sm:$0xff]  ;;  %v923_v12 = vld [vmem:[#allocation5 + $0x508] sm:$0xff] }
  0xe9   :  { %1208 = vmatpush.msra.mxu0 %v899_v1  ;;  %1230 = vmatpush.msra.mxu1 %v916_v3  ;;  %v495_v18 = vpop.f32.mrf.mxu1  ;;  %v748_v31 = vmax.f32 %v473_v19, 0.0  ;;  %v942_v1 = vld [vmem:[#allocation5 + $0x5a0] sm:$0xff] }
  0xea   :  { %1251 = vmatpush.msra.mxu2 %v934_v4  ;;  %1273 = vmatpush.msra.mxu3 %v951_v6  ;;  %v496_v24 = vadd.f32 %v495_v18, %v333_v52  ;;  %v906_v4 = vld [vmem:[#allocation5 + $0x480] sm:$0xff]  ;;  %v339_v6 = vperm.slane %v1589_v27, 3  ;;  %v939_v18 = vld [vmem:[#allocation5 + $0x588] sm:$0xff] }
  0xeb   :  { %1126 = vmatmul.f32.vlgmr.msrb.gmra.mxu0 %v732_v2  ;;  %1195 = vmatmul.f32.vlgmr.msrb.gmra.mxu3 %v735_v5  ;;  %v969_v2 = vld [vmem:[#allocation5 + $0x678] sm:$0xff]  ;;  %v924_v5 = vld [vmem:[#allocation5 + $0x510] sm:$0xff]  ;;  %v966_v19 = vld [vmem:[#allocation5 + $0x660] sm:$0xff] }
  0xec   :  { %1209 = vmatpush.msra.mxu0 %v898_v7  ;;  %1231 = vmatpush.msra.mxu1 %v915_v9  ;;  %v749_v37 = vmax.f32 %v496_v24, 0.0  ;;  %v941_v9 = vld [vmem:[#allocation5 + $0x598] sm:$0xff] }
  0xed   :  { %1252 = vmatpush.msra.mxu2 %v933_v10  ;;  %1274 = vmatpush.msra.mxu3 %v950_v11  ;;  %v518_v30 = vpop.f32.mrf.mxu2  ;;  %v968_v10 = vld [vmem:[#allocation5 + $0x670] sm:$0xff]  ;;  %v985_v11 = vld [vmem:[#allocation5 + $0x6f8] sm:$0xff] }
  0xee   :  { %1149 = vmatmul.f32.vlgmr.msrb.gmra.mxu1 %v733_v8  ;;  %1210 = vmatpush.msra.mxu0 %v897_v13  ;;  %v519_v43 = vadd.f32 %v518_v30, %v334_v35  ;;  %v940_v13 = vld [vmem:[#allocation5 + $0x590] sm:$0xff] }
  0xef   :  { %1232 = vmatpush.msra.mxu1 %v914_v14  ;;  %1253 = vmatpush.msra.mxu2 %v932_v15  ;;  %v967_v15 = vld [vmem:[#allocation5 + $0x668] sm:$0xff]  ;;  %v1000_v30 = vld [vmem:[#allocation5 + $0x770] sm:$0xff] }
  0xf0   :  { %1275 = vmatpush.msra.mxu3 %v949_v16  ;;  %1211 = vmatpush.msra.mxu0 %v896_v17  ;;  %v541_v40 = vpop.f32.mrf.mxu3  ;;  %v561_v41 = vpop.f32.mrf.mxu0  ;;  %v750_v55 = vmax.f32 %v519_v43, 0.0  ;;  %v984_v16 = vld [vmem:[#allocation5 + $0x6f0] sm:$0xff] }
  0xf1   :  { %1233 = vmatpush.msra.mxu1 %v913_v42  ;;  %1254 = vmatpush.msra.mxu2 %v931_v20  ;;  %v562_v49 = vadd.f32 %v561_v41, %v336_v36  ;;  %v542_v35 = vadd.f32 %v541_v40, %v335_v46  ;;  %v922_v42 = vld [vmem:[#allocation5 + $0x500] sm:$0xff]  ;;  %v983_v20 = vld [vmem:[#allocation5 + $0x6e8] sm:$0xff]  ;;  %v1016_v40 = vld [vmem:[#allocation5 + $0x7f0] sm:$0xff] }
  0xf2   :  { %1276 = vmatpush.msra.mxu3 %v948_v21  ;;  %1212 = vmatpush.msra.mxu0 %v895_v22  ;;  %v1001_v21 = vld [vmem:[#allocation5 + $0x778] sm:$0xff] }
  0xf3   :  { %1234 = vmatpush.msra.mxu1 %v912_v23  ;;  %1255 = vmatpush.msra.mxu2 %v930_v25  ;;  %v584_v52 = vpop.f32.mrf.mxu1  ;;  %v736_v61 = vmax.f32 %v562_v49, 0.0  ;;  %v751_v0 = vmax.f32 %v542_v35, 0.0  ;;  %v938_v25 = vld [vmem:[#allocation5 + $0x580] sm:$0xff] }
  0xf4   :  { %1277 = vmatpush.msra.mxu3 %v947_v26  ;;  %1213 = vmatpush.msra.mxu0 %v894_v28  ;;  %v585_v58 = vadd.f32 %v584_v52, %v337_v48  ;;  %v965_v26 = vld [vmem:[#allocation5 + $0x658] sm:$0xff]  ;;  %v982_v28 = vld [vmem:[#allocation5 + $0x6e0] sm:$0xff]  ;;  %v979_v52 = vld [vmem:[#allocation5 + $0x6c8] sm:$0xff] }
  0xf5   :  { %1235 = vmatpush.msra.mxu1 %v911_v29  ;;  %1256 = vmatpush.msra.mxu2 %v929_v32  ;;  %v998_v49 = vld [vmem:[#allocation5 + $0x760] sm:$0xff] }
  0xf6   :  { %1278 = vmatpush.msra.mxu3 %v946_v33  ;;  %1129 = vmatmul.f32.gmra.mxu0 %v748_v31  ;;  %v737_v3 = vmax.f32 %v585_v58, 0.0  ;;  %v1017_v31 = vld [vmem:[#allocation5 + $0x7f8] sm:$0xff] }
  0xf7   :  { %1236 = vmatpush.msra.mxu1 %v910_v34  ;;  %1214 = vmatpush.msra.mxu0 %v893_v38  ;;  %v607_v46 = vpop.f32.mrf.mxu2  ;;  %v981_v38 = vld [vmem:[#allocation5 + $0x6d8] sm:$0xff] }
  0xf8   :  { %1257 = vmatpush.msra.mxu2 %v928_v39  ;;  %1279 = vmatpush.msra.mxu3 %v945_v44  ;;  %v608_v8 = vadd.f32 %v607_v46, %v338_v59  ;;  %v999_v39 = vld [vmem:[#allocation5 + $0x768] sm:$0xff]  ;;  %v980_v44 = vld [vmem:[#allocation5 + $0x6d0] sm:$0xff]  ;;  %v1013_v58 = vld [vmem:[#allocation5 + $0x7d8] sm:$0xff] }
  0xf9   :  { %1152 = vmatmul.f32.gmra.mxu1 %v749_v37  ;;  %1215 = vmatpush.msra.mxu0 %v892_v45  ;;  %v964_v37 = vld [vmem:[#allocation5 + $0x650] sm:$0xff] }
  0xfa   :  { %1237 = vmatpush.msra.mxu1 %v909_v47  ;;  %1258 = vmatpush.msra.mxu2 %v927_v50  ;;  %v630_v7 = vpop.f32.mrf.mxu3  ;;  %v738_v17 = vmax.f32 %v608_v8, 0.0  ;;  %v1015_v50 = vld [vmem:[#allocation5 + $0x7e8] sm:$0xff]  ;;  %v976_v46 = vld [vmem:[#allocation5 + $0x6b0] sm:$0xff]  ;;  %v957_v8 = vld [vmem:[#allocation5 + $0x618] sm:$0xff] }
  0xfb   :  { %1280 = vmatpush.msra.mxu3 %v944_v51  ;;  %1216 = vmatpush.msra.mxu0 %v891_v53  ;;  %v631_v14 = vadd.f32 %v630_v7, %v339_v6  ;;  %v962_v51 = vld [vmem:[#allocation5 + $0x640] sm:$0xff]  ;;  %v340_v7 = vperm.slane %v1589_v27, 4 }
  0xfc   :  { %1238 = vmatpush.msra.mxu1 %v908_v54  ;;  %1259 = vmatpush.msra.mxu2 %v926_v56  ;;  %v1014_v54 = vld [vmem:[#allocation5 + $0x7e0] sm:$0xff] }
  0xfd   :  { %1281 = vmatpush.msra.mxu3 %v943_v57  ;;  %1175 = vmatmul.f32.gmra.mxu2 %v750_v55  ;;  %v739_v24 = vmax.f32 %v631_v14, 0.0  ;;  %v961_v55 = vld [vmem:[#allocation5 + $0x638] sm:$0xff]  ;;  %v978_v56 = vld [vmem:[#allocation5 + $0x6c0] sm:$0xff]  ;;  %v996_v57 = vld [vmem:[#allocation5 + $0x750] sm:$0xff] }
  0xfe   :  { %1217 = vmatpush.msra.mxu0 %v890_v60  ;;  %1239 = vmatpush.msra.mxu1 %v907_v62  ;;  %v960_v60 = vld [vmem:[#allocation5 + $0x630] sm:$0xff]  ;;  %v995_v62 = vld [vmem:[#allocation5 + $0x748] sm:$0xff] }
  0xff   :  { %1260 = vmatpush.msra.mxu2 %v925_v63  ;;  %1282 = vmatpush.msra.mxu3 %v942_v1  ;;  %v1012_v63 = vld [vmem:[#allocation5 + $0x7d0] sm:$0xff]  ;;  %v1011_v1 = vld [vmem:[#allocation5 + $0x7c8] sm:$0xff] }
 0x100   :  { %1218 = vmatmul.f32.vlgmr.msra.gmra.mxu0 %v736_v61  ;;  %1198 = vmatmul.f32.gmra.mxu3 %v751_v0  ;;  %v610_v23 = vpop.f32.mrf.mxu2  ;;  %v977_v61 = vld [vmem:[#allocation5 + $0x6b8] sm:$0xff]  ;;  %v994_v0 = vld [vmem:[#allocation5 + $0x740] sm:$0xff]  ;;  %v956_v14 = vld [vmem:[#allocation5 + $0x610] sm:$0xff] }
 0x101   :  { %1294 = vmatpush.msrb.mxu0 %v969_v2  ;;  %1240 = vmatpush.msra.mxu1 %v906_v4  ;;  %v564_v22 = vpop.f32.mrf.mxu0  ;;  %v611_v32 = vadd.f32 %v610_v23, %v338_v59  ;;  %v959_v59 = vld [vmem:[#allocation5 + $0x628] sm:$0xff]  ;;  %v958_v2 = vld [vmem:[#allocation5 + $0x620] sm:$0xff] }
 0x102   :  { %1261 = vmatpush.msra.mxu2 %v924_v5  ;;  %1283 = vmatpush.msra.mxu3 %v941_v9  ;;  %v565_v29 = vadd.f32 %v564_v22, %v336_v36  ;;  %v963_v36 = vld [vmem:[#allocation5 + $0x648] sm:$0xff]  ;;  %v993_v5 = vld [vmem:[#allocation5 + $0x738] sm:$0xff]  ;;  %v974_v9 = vld [vmem:[#allocation5 + $0x6a0] sm:$0xff] }
 0x103   :  { %1241 = vmatmul.f32.vlgmr.msra.gmra.mxu1 %v737_v3  ;;  %1295 = vmatpush.msrb.mxu0 %v968_v10  ;;  %v633_v34 = vpop.f32.mrf.mxu3  ;;  %v754_v47 = vmax.f32 %v611_v32, 0.0  ;;  %v975_v3 = vld [vmem:[#allocation5 + $0x6a8] sm:$0xff]  ;;  %v990_v22 = vld [vmem:[#allocation5 + $0x720] sm:$0xff]  ;;  %v343_v32 = vperm.slane %v1589_v27, 7 }
 0x104   :  { %1317 = vmatpush.msrb.mxu1 %v985_v11  ;;  %1262 = vmatpush.msra.mxu2 %v923_v12  ;;  %v587_v33 = vpop.f32.mrf.mxu1  ;;  %v634_v43 = vadd.f32 %v633_v34, %v339_v6  ;;  %v752_v45 = vmax.f32 %v565_v29, 0.0  ;;  %v1010_v6 = vld [vmem:[#allocation5 + $0x7c0] sm:$0xff]  ;;  %v992_v11 = vld [vmem:[#allocation5 + $0x730] sm:$0xff]  ;;  %v1009_v12 = vld [vmem:[#allocation5 + $0x7b8] sm:$0xff] }
 0x105   :  { %1284 = vmatpush.msra.mxu3 %v940_v13  ;;  %1296 = vmatpush.msrb.mxu0 %v967_v15  ;;  %v588_v41 = vadd.f32 %v587_v33, %v337_v48  ;;  %v997_v48 = vld [vmem:[#allocation5 + $0x758] sm:$0xff]  ;;  %v341_v13 = vperm.slane %v1589_v27, 5  ;;  %v1007_v23 = vld [vmem:[#allocation5 + $0x7a8] sm:$0xff]  ;;  %v970_v33 = vld [vmem:[#allocation5 + $0x680] sm:$0xff] }
 0x106   :  { %1318 = vmatpush.msrb.mxu1 %v984_v16  ;;  %1263 = vmatpush.msra.mxu2 %v922_v42  ;;  %v755_v53 = vmax.f32 %v634_v43, 0.0  ;;  %v973_v15 = vld [vmem:[#allocation5 + $0x698] sm:$0xff]  ;;  %v1008_v42 = vld [vmem:[#allocation5 + $0x7b0] sm:$0xff] }
 0x107   :  { %1285 = vmatpush.msra.mxu3 %v939_v18  ;;  %1264 = vmatmul.f32.vlgmr.msra.gmra.mxu2 %v738_v17  ;;  %v753_v35 = vmax.f32 %v588_v41, 0.0  ;;  %v991_v17 = vld [vmem:[#allocation5 + $0x728] sm:$0xff] }
 0x108   :  { %1297 = vmatpush.msrb.mxu0 %v966_v19  ;;  %1319 = vmatpush.msrb.mxu1 %v983_v20  ;;  %v955_v18 = vld [vmem:[#allocation5 + $0x608] sm:$0xff]  ;;  %v972_v19 = vld [vmem:[#allocation5 + $0x690] sm:$0xff] }
 0x109   :  { %1340 = vmatpush.msrb.mxu2 %v1001_v21  ;;  %1286 = vmatpush.msra.mxu3 %v938_v25  ;;  %v954_v25 = vld [vmem:[#allocation5 + $0x600] sm:$0xff] }
 0x10a   :  { %1298 = vmatpush.msrb.mxu0 %v965_v26  ;;  %1287 = vmatmul.f32.vlgmr.msra.gmra.mxu3 %v739_v24  ;;  %v342_v24 = vperm.slane %v1589_v27, 6  ;;  %v971_v26 = vld [vmem:[#allocation5 + $0x688] sm:$0xff] }
 0x10b   :  { %1320 = vmatpush.msrb.mxu1 %v982_v28  ;;  %1341 = vmatpush.msrb.mxu2 %v1000_v30  ;;  %v989_v30 = vld [vmem:[#allocation5 + $0x718] sm:$0xff] }
 0x10c   :  { %1363 = vmatpush.msrb.mxu3 %v1017_v31  ;;  %1299 = vmatpush.msrb.mxu0 %v964_v37  ;;  %v1006_v31 = vld [vmem:[#allocation5 + $0x7a0] sm:$0xff] }
 0x10d   :  { %1321 = vmatpush.msrb.mxu1 %v981_v38  ;;  %1342 = vmatpush.msrb.mxu2 %v999_v39  ;;  %v988_v39 = vld [vmem:[#allocation5 + $0x710] sm:$0xff] }
 0x10e   :  { %1364 = vmatpush.msrb.mxu3 %v1016_v40  ;;  %1300 = vmatpush.msrb.mxu0 %v963_v36  ;;  %v1005_v40 = vld [vmem:[#allocation5 + $0x798] sm:$0xff] }
 0x10f   :  { %1322 = vmatpush.msrb.mxu1 %v980_v44  ;;  %1343 = vmatpush.msrb.mxu2 %v998_v49  ;;  %v987_v44 = vld [vmem:[#allocation5 + $0x708] sm:$0xff]  ;;  %v986_v49 = vld [vmem:[#allocation5 + $0x700] sm:$0xff] }
 0x110   :  { %1365 = vmatpush.msrb.mxu3 %v1015_v50  ;;  %1221 = vmatmul.f32.gmra.mxu0 %v752_v45  ;;  %v1004_v45 = vld [vmem:[#allocation5 + $0x790] sm:$0xff]  ;;  %v1003_v50 = vld [vmem:[#allocation5 + $0x788] sm:$0xff] }
 0x111   :  { %1267 = vmatmul.f32.gmra.mxu2 %v754_v47  ;;  %1301 = vmatpush.msrb.mxu0 %v962_v51 }
 0x112   :  { %1323 = vmatpush.msrb.mxu1 %v979_v52  ;;  %1344 = vmatpush.msrb.mxu2 %v997_v48 }
 0x113   :  { %1366 = vmatpush.msrb.mxu3 %v1014_v54  ;;  %1244 = vmatmul.f32.gmra.mxu1 %v753_v35 }
 0x114   :  { %1290 = vmatmul.f32.gmra.mxu3 %v755_v53  ;;  %1302 = vmatpush.msrb.mxu0 %v961_v55  ;;  %v653_v4 = vpop.f32.mrf.mxu0  ;;  %v1002_v53 = vld [vmem:[#allocation5 + $0x780] sm:$0xff] }
 0x115   :  { %1324 = vmatpush.msrb.mxu1 %v978_v56  ;;  %1345 = vmatpush.msrb.mxu2 %v996_v57  ;;  %v654_v16 = vadd.f32 %v653_v4, %v340_v7 }
 0x116   :  { %1367 = vmatpush.msrb.mxu3 %v1013_v58  ;;  %1303 = vmatpush.msrb.mxu0 %v960_v60  ;;  %v676_v10 = vpop.f32.mrf.mxu1 }
 0x117   :  { %1325 = vmatpush.msrb.mxu1 %v977_v61  ;;  %1346 = vmatpush.msrb.mxu2 %v995_v62  ;;  %v677_v21 = vadd.f32 %v676_v10, %v341_v13  ;;  %v740_v29 = vmax.f32 %v654_v16, 0.0 }
 0x118   :  { %1368 = vmatpush.msrb.mxu3 %v1012_v63  ;;  %1304 = vmatpush.msrb.mxu0 %v959_v59 }
 0x119   :  { %1326 = vmatpush.msrb.mxu1 %v976_v46  ;;  %1347 = vmatpush.msrb.mxu2 %v994_v0  ;;  %v741_v37 = vmax.f32 %v677_v21, 0.0 }
 0x11a   :  { %1369 = vmatpush.msrb.mxu3 %v1011_v1  ;;  %1305 = vmatpush.msrb.mxu0 %v958_v2 }
 0x11b   :  { %1327 = vmatpush.msrb.mxu1 %v975_v3  ;;  %1348 = vmatpush.msrb.mxu2 %v993_v5  ;;  %v699_v20 = vpop.f32.mrf.mxu2 }
 0x11c   :  { %1370 = vmatpush.msrb.mxu3 %v1010_v6  ;;  %1306 = vmatpush.msrb.mxu0 %v957_v8  ;;  %v656_v34 = vpop.f32.mrf.mxu0  ;;  %v700_v38 = vadd.f32 %v699_v20, %v342_v24 }
 0x11d   :  { %1328 = vmatpush.msrb.mxu1 %v974_v9  ;;  %1349 = vmatpush.msrb.mxu2 %v992_v11  ;;  %v722_v28 = vpop.f32.mrf.mxu3  ;;  %v657_v43 = vadd.f32 %v656_v34, %v340_v7 }
 0x11e   :  { %1371 = vmatpush.msrb.mxu3 %v1009_v12  ;;  %1307 = vmatpush.msrb.mxu0 %v956_v14  ;;  %v723_v36 = vadd.f32 %v722_v28, %v343_v32  ;;  %v742_v27 = vmax.f32 %v700_v38, 0.0 }
 0x11f   :  { %1329 = vmatpush.msrb.mxu1 %v973_v15  ;;  %1350 = vmatpush.msrb.mxu2 %v991_v17  ;;  %v679_v41 = vpop.f32.mrf.mxu1  ;;  %v756_v52 = vmax.f32 %v657_v43, 0.0 }
 0x120   :  { %1372 = vmatpush.msrb.mxu3 %v1008_v42  ;;  %1308 = vmatpush.msrb.mxu0 %v955_v18  ;;  %v680_v47 = vadd.f32 %v679_v41, %v341_v13  ;;  %v743_v35 = vmax.f32 %v723_v36, 0.0 }
 0x121   :  { %1330 = vmatpush.msrb.mxu1 %v972_v19  ;;  %1351 = vmatpush.msrb.mxu2 %v990_v22 }
 0x122   :  { %1373 = vmatpush.msrb.mxu3 %v1007_v23  ;;  %1309 = vmatpush.msrb.mxu0 %v954_v25  ;;  %v757_v54 = vmax.f32 %v680_v47, 0.0 }
 0x123   :  { %1331 = vmatpush.msrb.mxu1 %v971_v26  ;;  %1352 = vmatpush.msrb.mxu2 %v989_v30  ;;  %v702_v51 = vpop.f32.mrf.mxu2 }
 0x124   :  { %1374 = vmatpush.msrb.mxu3 %v1006_v31  ;;  %1310 = vmatmul.f32.vlgmr.msrb.gmra.mxu0 %v740_v29  ;;  %v703_v55 = vadd.f32 %v702_v51, %v342_v24 }
 0x125   :  { %1332 = vmatpush.msrb.mxu1 %v970_v33  ;;  %1353 = vmatpush.msrb.mxu2 %v988_v39  ;;  %v725_v48 = vpop.f32.mrf.mxu3 }
 0x126   :  { %1375 = vmatpush.msrb.mxu3 %v1005_v40  ;;  %1333 = vmatmul.f32.vlgmr.msrb.gmra.mxu1 %v741_v37  ;;  %v726_v56 = vadd.f32 %v725_v48, %v343_v32  ;;  %v758_v57 = vmax.f32 %v703_v55, 0.0 }
 0x127   :  { %1354 = vmatpush.msrb.mxu2 %v987_v44 }
 0x128   :  { %1376 = vmatpush.msrb.mxu3 %v1004_v45  ;;  %v759_v58 = vmax.f32 %v726_v56, 0.0 }
 0x129   :  { %1355 = vmatpush.msrb.mxu2 %v986_v49 }
 0x12a   :  { %1377 = vmatpush.msrb.mxu3 %v1003_v50  ;;  %1356 = vmatmul.f32.vlgmr.msrb.gmra.mxu2 %v742_v27  ;;  %v1409_v50 = vld [vmem:[%s1624_s4] ss:$0 sm:$0xff] }
 0x12c   :  { %1378 = vmatpush.msrb.mxu3 %v1002_v53  ;;  %1313 = vmatmul.f32.gmra.mxu0 %v756_v52 }
 0x12d   :  { %1379 = vmatmul.f32.vlgmr.msrb.gmra.mxu3 %v743_v35 }
 0x12e   :  { %1336 = vmatmul.f32.gmra.mxu1 %v757_v54 }
 0x132   :  { %1359 = vmatmul.f32.gmra.mxu2 %v758_v57 }
 0x135   :  { %1382 = vmatmul.f32.gmra.mxu3 %v759_v58 }
 0x153   :  { %v1035_v60 = vpop.f32.mrf.mxu0 }
 0x157   :  { %v1058_v61 = vpop.f32.mrf.mxu1  ;;  %v1081_v62 = vpop.f32.mrf.mxu2 }
 0x158   :  { %v1059_v3 = vadd.f32 %v1058_v61, %v1035_v60 }
 0x15a   :  { %v1104_v59 = vpop.f32.mrf.mxu3  ;;  %v1082_v5 = vadd.f32 %v1081_v62, %v1059_v3 }
 0x15c   :  { %v1105_v9 = vadd.f32 %v1104_v59, %v1082_v5 }
 0x15e   :  { %v1038_v63 = vpop.f32.mrf.mxu0 }
 0x161   :  { %v1061_v46 = vpop.f32.mrf.mxu1  ;;  %v1084_v0 = vpop.f32.mrf.mxu2 }
 0x162   :  { %v1062_v6 = vadd.f32 %v1061_v46, %v1038_v63 }
 0x164   :  { %v1107_v2 = vpop.f32.mrf.mxu3  ;;  %v1085_v11 = vadd.f32 %v1084_v0, %v1062_v6 }
 0x166   :  { %v1108_v14 = vadd.f32 %v1107_v2, %v1085_v11 }
 0x168   :  { %v1127_v1 = vpop.f32.mrf.mxu0 }
 0x169   :  { %v1128_v13 = vadd.f32 %v1127_v1, %v1105_v9 }
 0x16b   :  { %v1150_v4 = vpop.f32.mrf.mxu1  ;;  %v1173_v7 = vpop.f32.mrf.mxu2 }
 0x16c   :  { %v1151_v16 = vadd.f32 %v1150_v4, %v1128_v13 }
 0x16e   :  { %v1196_v10 = vpop.f32.mrf.mxu3  ;;  %v1174_v19 = vadd.f32 %v1173_v7, %v1151_v16 }
 0x170   :  { %v1197_v22 = vadd.f32 %v1196_v10, %v1174_v19 }
 0x173   :  { %v1130_v8 = vpop.f32.mrf.mxu0 }
 0x174   :  { %v1131_v18 = vadd.f32 %v1130_v8, %v1108_v14 }
 0x176   :  { %v1153_v12 = vpop.f32.mrf.mxu1 }
 0x177   :  { %v1154_v21 = vadd.f32 %v1153_v12, %v1131_v18 }
 0x17d   :  { %v1219_v17 = vpop.f32.mrf.mxu0 }
 0x17e   :  { %v1220_v25 = vadd.f32 %v1219_v17, %v1197_v22 }
 0x180   :  { %v1176_v15 = vpop.f32.mrf.mxu2  ;;  %v1242_v20 = vpop.f32.mrf.mxu1 }
 0x181   :  { %v1177_v26 = vadd.f32 %v1176_v15, %v1154_v21  ;;  %v1243_v30 = vadd.f32 %v1242_v20, %v1220_v25 }
 0x183   :  { %v1199_v42 = vpop.f32.mrf.mxu3 }
 0x184   :  { %v1200_v31 = vadd.f32 %v1199_v42, %v1177_v26 }
 0x18a   :  { %v1265_v23 = vpop.f32.mrf.mxu2 }
 0x18b   :  { %v1266_v32 = vadd.f32 %v1265_v23, %v1243_v30 }
 0x18d   :  { %v1222_v24 = vpop.f32.mrf.mxu0  ;;  %v1288_v28 = vpop.f32.mrf.mxu3 }
 0x18e   :  { %v1223_v34 = vadd.f32 %v1222_v24, %v1200_v31  ;;  %v1289_v38 = vadd.f32 %v1288_v28, %v1266_v32 }
 0x190   :  { %v1245_v29 = vpop.f32.mrf.mxu1 }
 0x191   :  { %v1246_v41 = vadd.f32 %v1245_v29, %v1223_v34 }
 0x194   :  { %v1268_v37 = vpop.f32.mrf.mxu2 }
 0x195   :  { %v1269_v36 = vadd.f32 %v1268_v37, %v1246_v41 }
 0x197   :  { %v1291_v39 = vpop.f32.mrf.mxu3 }
 0x198   :  { %v1292_v47 = vadd.f32 %v1291_v39, %v1269_v36 }
 0x1a1   :  { %v1311_v33 = vpop.f32.mrf.mxu0 }
 0x1a2   :  { %v1312_v43 = vadd.f32 %v1311_v33, %v1289_v38 }
 0x1a3   :  { %v1334_v40 = vpop.f32.mrf.mxu1 }
 0x1a4   :  { %v1335_v44 = vadd.f32 %v1334_v40, %v1312_v43 }
 0x1a9   :  { %v1314_v45 = vpop.f32.mrf.mxu0 }
 0x1aa   :  { %v1315_v52 = vadd.f32 %v1314_v45, %v1292_v47 }
 0x1ab   :  { %v1337_v53 = vpop.f32.mrf.mxu1 }
 0x1ac   :  { %v1338_v54 = vadd.f32 %v1337_v53, %v1315_v52 }
 0x1ad   :  { %v1357_v27 = vpop.f32.mrf.mxu2 }
 0x1ae   :  { %v1358_v49 = vadd.f32 %v1357_v27, %v1335_v44 }
 0x1b0   :  { %v1380_v51 = vpop.f32.mrf.mxu3 }
 0x1b1   :  { %v1381_v35 = vadd.f32 %v1380_v51, %v1358_v49 }
 0x1b3   :  { %v1386_v48 = vadd.f32 %v1409_v50, %v1381_v35 }
 0x1b5   :  { %1395 = vst [vmem:[%s1625_s5] sm:$0xff] %v1386_v48  ;;  %v1360_v55 = vpop.f32.mrf.mxu2 }
 0x1b6   :  { %v1361_v56 = vadd.f32 %v1360_v55, %v1338_v54 }
 0x1b8   :  { %v1383_v57 = vpop.f32.mrf.mxu3 }
 0x1b9   :  { %v1384_v58 = vadd.f32 %v1383_v57, %v1361_v56 }
 0x1bb   :  { %v1387_v60 = vadd.f32 %v1409_v50, %v1384_v58 }
 0x1bd   :  { %1396 = vst [vmem:[%s1625_s5 + $0x8] sm:$0xff] %v1387_v60 }
 0x1be   :  { %1401 = vsyncpa [#allocation4], 1 }
 0x1bf   :  { %1402 = vsyncpa [#allocation6], 1 }

</bundles_post_ra>
